<compile_context>
chip_gen: v7x
topology: tpu7x:2x2x1
jax: 0.10.0
libtpu: 0.0.40
codegen_flags: <defaults>
</compile_context>

<pallas_src>
import jax
import jax.numpy as jnp
from jax.experimental import pallas as pl
from jax.experimental.pallas import tpu as pltpu

_PACK = 128  # logical rows packed into the lane dimension of one super-row


def _round_up(x, m):
    return (x + m - 1) // m * m


def _pick_super_rows(n_super_rows, row_bytes):
    """Super-rows (= _PACK logical rows each) per grid step.

    Targets ~4 MiB of x per step (amortizes the ~0.35 us per-step pipeline
    overhead to ~85-90% of HBM roofline) while keeping >= 4 tiles for v7x's
    two TensorCores when the batch is large enough.  Rows are lane-dense, so
    nominal bytes == real (padded) VMEM bytes.
    """
    target_tile_bytes = 4 * 1024 * 1024
    tsr = max(8, target_tile_bytes // row_bytes)
    if n_super_rows >= 32:
        # >= 2 tiles per TensorCore on v7x; neutral on v5e/v6e.
        tsr = min(tsr, _round_up(pl.cdiv(n_super_rows, 4), 8))
    if tsr >= n_super_rows:
        return n_super_rows                       # single full-extent tile
    return max(8, (tsr // 8) * 8)                 # sublane-aligned


def _logreg_kernel(x_ref, w_ref, b_ref, o_ref):
    # x_ref: (Tsr, PACK*F)  lane-dense x tile (pipelined over the batch).
    # w_ref: (PACK*F, PACK) block-diagonal weight, constant index_map -> resident.
    # b_ref: (1,)           SMEM f32 bias scalar.
    # o_ref: (Tsr, PACK)    lane-dense output tile (unmasked stores).
    logits = jnp.dot(x_ref[...], w_ref[...],
                     preferred_element_type=jnp.float32)   # MXU, f32 acc
    logits = logits + b_ref[0]
    o_ref[...] = jax.nn.sigmoid(logits).astype(o_ref.dtype)  # EUP sigmoid


def logistic_regression(x, weight, bias, *, use_kernel=None, block_super_rows=None):
    """x: [B, F] (f32 or bf16), weight: [1, F] (PyTorch nn.Linear layout),
    bias: [1]. Returns sigmoid(x @ weight.T + bias) with shape [B, 1]."""
    B, F = x.shape
    itemsize = jnp.dtype(x.dtype).itemsize
    P = _PACK

    w_blk_bytes = P * F * P * itemsize
    tiny = B * F * itemsize < (1 << 20)
    if use_kernel is None:
        # For very wide F the lane-padding problem this kernel solves does not
        # exist and the block-diagonal weight would be large; use plain XLA.
        use_kernel = (not tiny) and (w_blk_bytes <= (4 << 20))

    if not use_kernel:
        # Tiny-batch / wide-F fast path: a fused XLA op beats kernel-launch +
        # per-step overhead at these sizes.
        logits = (x.astype(jnp.float32)
                  @ weight.reshape(F, 1).astype(jnp.float32)
                  + bias.reshape(1).astype(jnp.float32))
        return jax.nn.sigmoid(logits).astype(x.dtype)

    # ---- lane-dense packed path -------------------------------------------
    B_pad = _round_up(B, P)
    x_p = x if B_pad == B else jnp.pad(x, ((0, B_pad - B), (0, 0)))
    n_sr = B_pad // P
    x2 = x_p.reshape(n_sr, P * F)                 # free row-major reshape

    # Block-diagonal weight (P*F, P): column j holds w at rows j*F:(j+1)*F, so
    # (x2 @ w_blk)[r, j] == sum_f x[r*P + j, f] * w[f].
    wc = weight.reshape(F).astype(x.dtype)        # MXU eats bf16/f32 directly
    eye = jnp.eye(P, dtype=x.dtype)
    w_blk = (eye[:, None, :] * wc[None, :, None]).reshape(P * F, P)
    b = bias.reshape(1).astype(jnp.float32)       # scalar, lives in SMEM

    row_bytes = P * F * itemsize
    tsr = block_super_rows or _pick_super_rows(n_sr, row_bytes)
    num_tiles = pl.cdiv(n_sr, tsr)

    cost = pl.CostEstimate(
        flops=2 * n_sr * (P * F) * P,
        transcendentals=n_sr * P,
        bytes_accessed=n_sr * P * F * itemsize + P * F * P * itemsize
                       + n_sr * P * itemsize + 4,
    )

    out2 = pl.pallas_call(
        _logreg_kernel,
        out_shape=jax.ShapeDtypeStruct((n_sr, P), x.dtype),
        grid=(num_tiles,),
        in_specs=[
            # x: one (tsr, P*F) lane-dense tile per step -> double-buffered DMA.
            pl.BlockSpec((tsr, P * F), lambda i: (i, 0)),
            # weight: same block every step -> stays VMEM-resident.
            pl.BlockSpec((P * F, P), lambda i: (0, 0)),
            # bias: scalar in SMEM.
            pl.BlockSpec(memory_space=pltpu.MemorySpace.SMEM),
        ],
        out_specs=pl.BlockSpec((tsr, P), lambda i: (i, 0)),
        compiler_params=pltpu.CompilerParams(
            # Independent batch tiles -> shard across v7x's 2 TensorCores.
            dimension_semantics=("parallel",),
            vmem_limit_bytes=32 * 1024 * 1024,
        ),
        cost_estimate=cost,
    )(x2, w_blk, b)

    # (n_sr, P) -> (B_pad, 1) is a free row-major reshape; drop padded rows.
    return out2.reshape(B_pad, 1)[:B]


if __name__ == "__main__":
    key = jax.random.PRNGKey(0)
    kx, kw, kb, kx2, kx3 = jax.random.split(key, 5)

    n_features = 32

    # nn.Linear(n_features, 1) parameters (PyTorch layout).
    weight = jax.random.normal(kw, (1, n_features), dtype=jnp.float32) * 0.1
    bias = jax.random.normal(kb, (1,), dtype=jnp.float32) * 0.1

    def ref_fn(xv):
        return jax.nn.sigmoid(xv.astype(jnp.float32) @ weight.T + bias)

    # 1) Tiny batch -> XLA fast path.
    x_small = jax.random.normal(kx, (8, n_features), dtype=jnp.float32)
    y_small = logistic_regression(x_small, weight, bias)
    jax.block_until_ready(y_small)
    assert y_small.shape == (8, 1)
    assert jnp.allclose(y_small, ref_fn(x_small), atol=1e-5, rtol=1e-5)

    # 2) Modest batch, not a multiple of 128, kernel path forced: exercises
    #    row packing, padding, multi-tile pipeline and the remainder block.
    x_mid = jax.random.normal(kx2, (4173, n_features), dtype=jnp.float32)
    y_mid = logistic_regression(x_mid, weight, bias, use_kernel=True)
    jax.block_until_ready(y_mid)
    assert y_mid.shape == (4173, 1)
    assert jnp.allclose(y_mid, ref_fn(x_mid), atol=1e-5, rtol=1e-5)

    # 3) Same batch in bf16: fed straight to the MXU (no in-kernel upcast).
    x_bf16 = x_mid.astype(jnp.bfloat16)
    y_bf16 = logistic_regression(x_bf16, weight, bias, use_kernel=True)
    jax.block_until_ready(y_bf16)
    assert y_bf16.shape == (4173, 1)
    assert jnp.allclose(y_bf16.astype(jnp.float32), ref_fn(x_bf16),
                        atol=2e-2, rtol=2e-2)

    # 4) Larger batch taking the kernel path automatically (multi-tile, f32).
    x_big = jax.random.normal(kx3, (16384, n_features), dtype=jnp.float32)
    y_big = logistic_regression(x_big, weight, bias)
    jax.block_until_ready(y_big)
    assert y_big.shape == (16384, 1)
    assert jnp.allclose(y_big, ref_fn(x_big), atol=1e-5, rtol=1e-5)

    print("KERNEL_OK")
</pallas_src>

<mosaic_0001>
module attributes {stable_mosaic.version = 11 : i64} {
  func.func @_logreg_kernel(%arg0: i32, %arg1: memref<16x4096xf32, #tpu.memory_space<vmem>>, %arg2: memref<4096x128xf32, #tpu.memory_space<vmem>>, %arg3: memref<1xf32, #tpu.memory_space<smem>>, %arg4: memref<16x128xf32, #tpu.memory_space<vmem>>) attributes {dimension_semantics = [#tpu.dimension_semantics<parallel>], iteration_bounds = array<i64: 3>, scalar_prefetch = 0 : i64, scratch_operands = 0 : i64, tpu.core_type = #tpu.core_type<tc>, window_params = [{transform_indices = @transform_0, window_bounds = array<i64: 16, 4096>}, {pipeline_mode = #tpu.pipeline_mode<synchronous>, transform_indices = @transform_1, window_bounds = array<i64: 4096, 128>}, {transform_indices = @transform_2, window_bounds = array<i64: 1>}, {transform_indices = @transform_3, window_bounds = array<i64: 16, 128>}]} {
    %c0 = arith.constant 0 : index
    %c0_0 = arith.constant 0 : index
    %0 = vector.load %arg1[%c0, %c0_0] : memref<16x4096xf32, #tpu.memory_space<vmem>>, vector<16x4096xf32>
    %c0_1 = arith.constant 0 : index
    %c0_2 = arith.constant 0 : index
    %1 = vector.load %arg2[%c0_1, %c0_2] : memref<4096x128xf32, #tpu.memory_space<vmem>>, vector<4096x128xf32>
    %cst = arith.constant dense<0.000000e+00> : vector<16x128xf32>
    %2 = tpu.matmul %0, %1, %cst {dimension_numbers = #tpu.dot_dimension_numbers<[1], [0], [0], [1], [0, 0, 1, 1], [], []>} : vector<16x4096xf32>, vector<4096x128xf32>, vector<16x128xf32> -> vector<16x128xf32>
    %c0_3 = arith.constant 0 : index
    %3 = memref.load %arg3[%c0_3] : memref<1xf32, #tpu.memory_space<smem>>
    %4 = vector.broadcast %3 : f32 to vector<16x128xf32>
    %5 = arith.addf %2, %4 : vector<16x128xf32>
    %6 = arith.negf %5 : vector<16x128xf32>
    %7 = math.exp %6 : vector<16x128xf32>
    %cst_4 = arith.constant 1.000000e+00 : f32
    %8 = vector.broadcast %cst_4 : f32 to vector<16x128xf32>
    %9 = arith.addf %8, %7 : vector<16x128xf32>
    %10 = arith.divf %8, %9 : vector<16x128xf32>
    %c0_5 = arith.constant 0 : index
    %c0_6 = arith.constant 0 : index
    %11 = vector.load %arg4[%c0_5, %c0_6] : memref<16x128xf32, #tpu.memory_space<vmem>>, vector<16x128xf32>
    tpu.vector_store %arg4[%c0_5, %c0_6], %10 {strides = array<i32>} : memref<16x128xf32, #tpu.memory_space<vmem>>, vector<16x128xf32>,
    return
  }
  func.func @transform_0(%arg0: i32) -> (i32, i32) {
    %c0_i32 = arith.constant 0 : i32
    %c0_i32_0 = arith.constant 0 : i32
    return %arg0, %c0_i32 : i32, i32
  }
  func.func @transform_1(%arg0: i32) -> (i32, i32) {
    %c0_i32 = arith.constant 0 : i32
    %c0_i32_0 = arith.constant 0 : i32
    %c0_i32_1 = arith.constant 0 : i32
    return %c0_i32, %c0_i32_0 : i32, i32
  }
  func.func @transform_2(%arg0: i32) -> i32 {
    %c0_i32 = arith.constant 0 : i32
    %c0_i32_0 = arith.constant 0 : i32
    return %c0_i32 : i32
  }
  func.func @transform_3(%arg0: i32) -> (i32, i32) {
    %c0_i32 = arith.constant 0 : i32
    %c0_i32_0 = arith.constant 0 : i32
    return %arg0, %c0_i32 : i32, i32
  }
}

</mosaic_0001>

<bundles_post_ra>
// kernel: tpu_custom_call.1
= control target key start
LH: loop header
LB: loop body
LE: loop exit
PB: predicated region body
PF: predicated region fallthrough
CT: control target
= control target key end

     0   :  { %s3774_s0 = inlined_call_operand.hbm [shape: f32[33,4096], index: 0, kind: input, shape index: {}]   ;;  %s3775_s1 = inlined_call_operand.hbm [shape: f32[4096,128], index: 1, kind: input, shape index: {}]   ;;  %s3776_s2 = inlined_call_operand.<no memory space> [shape: f32[1], index: 2, kind: input, shape index: {}]   ;;  %s3777_s3 = inlined_call_operand.hbm [shape: f32[33,128], index: 3, kind: output, shape index: {}]  }
   0x1   :  { %8 = sst [smem:[#allocation2]] %s3776_s2 }
   0x2   :  { %9 = vsyncpa [#allocation4], 0 }
   0x3   :  { %11 = vsyncpa [#allocation4 + $0x1], 0 }
   0x4   :  { %12 = vsyncpa [#allocation7], 0 }
   0x5   :  { %13 = vsyncpa [#allocation5], 0 }
   0x6   :  { %15 = vsyncpa [#allocation5 + $0x1], 0  ;;  %s3495_s14 = smov 0   ;;  %s3497_s15 = smov 0  }
   0x7   :  { %s3499_s16 = smov 0   ;;  %s3501_s17 = smov 0  }
   0x8 LB: > { %s3516_s2 = sadd.s32 4294967295, %s3461_s17   ;;  %s2119_s18 = sadd.s32 4294967294, %s3461_s17   ;;  %s3461_s17 = sphi %s3501_s17, %s3797_s17   ;;  %s3457_s16 = sphi %s3499_s16, %s3796_s16   ;;  %s3453_s15 = sphi %s3497_s15, %s3795_s15   ;;  %s3449_s14 = sphi %s3495_s14, %s3794_s14  }
   0x9   : > { %s3520_s19 = sadd.s32 1, %s3461_s17   ;;  %s28_s20 = sadd.s32 1, %s3457_s16 }
   0xa   : > { %s25_s21 = ssub.s32 %s3461_s17, %s3520_s19  ;;  %p35_p0 = scmp.ne.s32.totalorder %s3457_s16, %s3453_s15 }
   0xb   : > { %p26_p1 = scmp.eq.s32.totalorder %s25_s21, 0  ;;  %p36_p2 = scmp.eq.s32.totalorder %s3461_s17, 0 }
   0xc   : > { %p41_p3 = scmp.ne.s32.totalorder %s3453_s15, %s3449_s14  ;;  %p3778_p4 = scmp.eq.s32.totalorder %s3516_s2, 0 }
   0xd   : > { %s3532_s22 = scalar_select %p26_p1, %s3457_s16, %s28_s20  }
   0xe   : > { %p3534_p5 = por %p36_p2, %p35_p0  ;;  %p3540_p6 = por %p3778_p4, %p41_p3 }
   0xf   : > { %p107_p7 = scmp.eq.s32.totalorder %s3516_s2, 2  ;;  %p113_p8 = scmp.eq.s32.totalorder %s2119_s18, 2 }
  0x10   : > { %s3781_s23 = scalar_select %p3534_p5, 1, 0 }
  0x11   : > { %s3782_s24 = scalar_select %p3540_p6, 1, 0 }
  0x12   : > { %p2120_p9 = scmp.ge.s32.totalorder %s3461_s17, 1  ;;  %p120_p10 = scmp.lt.s32.totalorder %s3461_s17, 4 }
  0x13   : > { %p3547_p11 = por %p107_p7, %p35_p0  ;;  %p3551_p12 = por %p113_p8, %p41_p3 }
  0x14   : > { %p3555_p13 = pnand %p2120_p9, %p120_p10  ;;  %s3463_s28 = smov [#allocation6]  }
  0x15   : > { %s3783_s25 = scalar_select %p3547_p11, 1, 0 }
  0x16   : > { %s3784_s26 = scalar_select %p3551_p12, 1, 0 }
  0x17   : > { %s3785_s27 = scalar_select %p3555_p13, 1, 0 }
  0x18   : > { %p3277_p1 = pneg %p3555_p13  ;;  %s132_s29 = sshll.u32 %s3463_s28, 4  ;;  %s133_s29 = int_to_ptr.vmem [resolvable:$true] %s132_s29 }
  0x19   : > { %s3335_s6 = scalar_lea.hbm %s3775_s1, 65536 }
  0x1a   : > { %p3563_p2 = pnand %p3277_p1, %p3778_p4  ;;  %p3336_p0 = scmp.ne.s32.totalorder %s3775_s1, %s3335_s6 }
  0x1b   : > { %p3342_p9 = scmp.lt.u32.totalorder %s3335_s6, %s3775_s1 }
  0x1c   : > { %p3337_p3 = pneg %p3563_p2 }
  0x1e   : > { %p3338_p7 = pnand %p3337_p3, %p3336_p0 }
  0x20   : > { %p3339_p8 = pneg %p3338_p7 }
  0x22   : > { %p3344_p10 = pnand %p3342_p9, %p3339_p8 }
  0x24   : > { %3347 = shalt.err (!%p3344_p10)
}
  0x25   : > { %s3348_s11 = scalar_lea.vmem %s133_s29, 65536  ;;  %p3356_p11 = scmp.lt.s32.totalorder %s133_s29, %s133_s29 }
  0x26   : > { %p3349_p1 = scmp.ne.s32.totalorder %s133_s29, %s3348_s11  ;;  %p3357_p6 = scmp.lt.s32.totalorder %s3348_s11, %s3348_s11 }
  0x28   : > { %p3351_p4 = pnand %p3349_p1, %p3337_p3  ;;  %p3358_p13 = por %p3357_p6, %p3356_p11 }
  0x2a   : > { %p3352_p12 = pneg %p3351_p4 }
  0x2c   : > { %p3359_p5 = pnand %p3358_p13, %p3352_p12 }
  0x2e   : > { %3362 = shalt.err (!%p3359_p5)
}
  0x2f   : > { %s3464_s12 = smov 128   ;;  %s3465_s13 = smov 8  }
  0x30   : > { %3280 = dma.hbm_to_vmem [thread:$0]  (!%p3563_p2), %s3775_s1, 65536, %s133_s29, [#allocation7], %s3464_s12, %s3464_s12, %s3465_s13  }
  0x31   : > { %p2122_p0 = scmp.ge.s32.totalorder %s3461_s17, 3 }
  0x32   : > { %p3787_p7 = scmp.ne.s32.totalorder (!%p2122_p0), %s3781_s23, 0 }
  0x33   : > { %145 = sbr.rel (%p2122_p0) target bundleno = 93 (0x5d), region = 24 }
  0x3a   : > { %148 = sbr.rel (!%p3787_p7) target bundleno = 93 (0x5d), region = 28  ;;  %s149_s21 = sand.u32 (%p3787_p7), 1, %s3457_s16  }
  0x3b   : > { %s2124_s28 = sshll.u32 (%p3787_p7), %s3461_s17, 1  ;;  %s2123_s4 = sshll.u32 (%p3787_p7), %s149_s21, 9 }
  0x3c   : > { %s155_s5 = ssub.s32 (%p3787_p7), 5, %s2124_s28  ;;  %s3591_s7 = scalar_lea.sflag (%p3787_p7), [#allocation4], %s149_s21 }
  0x3d   : > { %p156_p4 = scmp.lt.s32.totalorder (%p3787_p7), %s155_s5, 2  ;;  %s153_s29 = scalar_lea.vmem (%p3787_p7), [#allocation3], %s2123_s4 }
  0x41   : > { %s3799_s5 = smov (!%p156_p4, %s155_s5), 2 }
  0x42   : > { %s3588_s6 = sshll.u32 %s3799_s5, 12 }
  0x43   : > { %s161_s30 = ssub.s32 8192, %s3588_s6 }
  0x44   : > { %162 = vsyncadd %s3591_s7, %s161_s30  ;;  %p2127_p5 = scmp.ne.s32.totalorder %s3588_s6, 0  ;;  %s2149_s23 = sshll.u32 %s3461_s17, 13 }
  0x45   : > { %s3599_s10 = scalar_lea.hbm %s3774_s0, %s2149_s23  ;;  %s168_s11 = sshll.u32 %s153_s29, 4  ;;  %s3601_s11 = int_to_ptr.vmem [resolvable:$true] %s168_s11 }
  0x46   : > { %s3363_s12 = scalar_lea.hbm %s3599_s10, %s3588_s6  ;;  %s3367_s20 = scalar_lea.hbm %s3774_s0, 20480 }
  0x47   : > { %p3364_p6 = scmp.ne.s32.totalorder %s3599_s10, %s3363_s12  ;;  %p3368_p13 = scmp.lt.u32.totalorder %s3599_s10, %s3774_s0 }
  0x48   : > { %p3369_p2 = scmp.lt.u32.totalorder %s3367_s20, %s3363_s12  ;;  %p3371_p8 = scmp.lt.u32.totalorder %s3363_s12, %s3599_s10 }
  0x49   : > { %p3365_p11 = pnand %p3364_p6, %p2127_p5 }
  0x4a   : > { %p3370_p3 = por %p3369_p2, %p3368_p13 }
  0x4b   : > { %p3366_p12 = pneg %p3365_p11 }
  0x4c   : > { %p3372_p9 = por %p3371_p8, %p3370_p3 }
  0x4e   : > { %p3373_p10 = pnand %p3372_p9, %p3366_p12 }
  0x50   : > { %3376 = shalt.err (!%p3373_p10)
}
  0x51   : > { %s3377_s4 = scalar_lea.vmem %s3601_s11, %s3588_s6  ;;  %s3466_s5 = smov [#allocation3]  }
  0x52   : > { %p3378_p1 = scmp.ne.s32.totalorder %s3601_s11, %s3377_s4  ;;  %s3381_s30 = sshll.u32 %s3466_s5, 4  ;;  %s3382_s30 = int_to_ptr.vmem [resolvable:$false] %s3381_s30 }
  0x53   : > { %s3383_s29 = scalar_lea.vmem %s3382_s30, 16384  ;;  %p3384_p4 = scmp.lt.s32.totalorder %s3601_s11, %s3382_s30 }
  0x54   : > { %p3379_p0 = pnand %p3378_p1, %p2127_p5  ;;  %p3385_p6 = scmp.lt.s32.totalorder %s3383_s29, %s3377_s4 }
  0x56   : > { %p3380_p7 = pneg %p3379_p0  ;;  %p3386_p11 = por %p3385_p6, %p3384_p4 }
  0x58   : > { %p3387_p13 = pnand %p3386_p11, %p3380_p7 }
  0x5a   : > { %3390 = shalt.err (!%p3387_p13)
}
  0x5b   : > { %s3467_s23 = smov 4096   ;;  %s3468_s8 = smov 256  }
  0x5c   : > { %174 = dma.hbm_to_vmem [thread:$0]  (%p2127_p5), %s3599_s10, %s3588_s6, %s3601_s11, %s3591_s7, %s3467_s23, %s3467_s23, %s3468_s8  }
  0x5d PF: > { %p3788_p12 = scmp.ne.s32.totalorder %s3785_s27, 0 }
  0x5e   : > { %s3631_s9 = sand.u32 (!%p3788_p12), 1, %s3453_s15   ;;  %p3789_p2 = scmp.ne.s32.totalorder (!%p3788_p12), %s3782_s24, 0 }
  0x5f   : > { %180 = sbr.rel (%p3788_p12) target bundleno = 643 (0x283), region = 32  ;;  %s2133_s12 = sshll.u32 (!%p3788_p12), %s3631_s9, 9 }
  0x60   : > { %s183_s13 = scalar_lea.sflag (!%p3788_p12), [#allocation4], %s3631_s9  ;;  %s3635_s18 = scalar_lea.vmem (!%p3788_p12), [#allocation3], %s2133_s12 }
  0x66   : > { %3436 = dma.done.wait (%p3789_p2), %s183_s13, 8192  }
  0x67   : > { %3438 = vsyncadd (%p3789_p2), %s183_s13, 4294959104  ;;  %p3790_p5 = scmp.eq.s32.totalorder %s3516_s2, 0 }
  0x69   : > { %3440 = dma.done.wait (%p3790_p5), [#allocation7], 65536   ;;  %p3791_p3 = pmov %p3790_p5 }
  0x6a   : > { %v304_v0 = vld [vmem:[#allocation6 + $0x80] sm:$0xff]  ;;  %v305_v1 = vld [vmem:[#allocation6 + $0x88] sm:$0xff]  ;;  %v306_v11 = vld [vmem:[#allocation6 + $0x90] sm:$0xff]  ;;  %s3703_s24 = sld [smem:[#allocation2]]  ;;  %s2135_s27 = sshll.u32 %s3631_s9, 4 }
  0x6b   : > { %3442 = vsyncadd (%p3791_p3), [#allocation7], 4294901760  ;;  %v288_v2 = vld [vmem:[#allocation6] sm:$0xff]  ;;  %v2759_v3 = vpack.c.bf16 %v305_v1, %v304_v0  ;;  %v289_v4 = vld [vmem:[#allocation6 + $0x8] sm:$0xff]  ;;  %s212_s6 = scalar_lea.vmem [#allocation8], %s2135_s27  ;;  %s2017_s7 = scalar_lea.sflag [#allocation5], %s3631_s9 }
  0x6c   : > { %v336_v5 = vld [vmem:[#allocation6 + $0x180] sm:$0xff]  ;;  %v337_v6 = vld [vmem:[#allocation6 + $0x188] sm:$0xff]  ;;  %v2761_v7 = vpack.c.bf16 %v289_v4, %v288_v2  ;;  %v307_v13 = vld [vmem:[#allocation6 + $0x98] sm:$0xff]  ;;  %p3792_p8 = scmp.ne.s32.totalorder %s3783_s25, 0 }
  0x6d   : > { %v2791_v8 = vpack.c.bf16 %v337_v6, %v336_v5  ;;  %v320_v9 = vld [vmem:[#allocation6 + $0x100] sm:$0xff]  ;;  %v321_v10 = vld [vmem:[#allocation6 + $0x108] sm:$0xff]  ;;  %2760 = vmatprep.subr.bf16.mxu0 %v2759_v3  ;;  %v290_v14 = vld [vmem:[#allocation6 + $0x10] sm:$0xff]  ;;  %v2763_v16 = vpack.c.bf16 %v307_v13, %v306_v11  ;;  %s2139_s10 = sshll.u32 (%p3792_p8), %s3516_s2, 1 }
  0x6e   : > { %v2793_v12 = vpack.c.bf16 %v321_v10, %v320_v9  ;;  %v291_v15 = vld [vmem:[#allocation6 + $0x18] sm:$0xff]  ;;  %2762 = vmatpush3.bf16.msra.mxu0 %v2761_v7  ;;  %v338_v18 = vld [vmem:[#allocation6 + $0x190] sm:$0xff]  ;;  %v308_v23 = vld [vmem:[#allocation6 + $0xa0] sm:$0xff]  ;;  %s2025_s11 = ssub.s32 (%p3792_p8), 5, %s2139_s10 }
  0x6f   : > { %2792 = vmatprep.subr.bf16.mxu1 %v2791_v8  ;;  %v2765_v17 = vpack.c.bf16 %v291_v15, %v290_v14  ;;  %v339_v19 = vld [vmem:[#allocation6 + $0x198] sm:$0xff]  ;;  %v322_v20 = vld [vmem:[#allocation6 + $0x110] sm:$0xff]  ;;  %v309_v24 = vld [vmem:[#allocation6 + $0xa8] sm:$0xff]  ;;  %2764 = vmatprep.subr.bf16.mxu0 %v2763_v16  ;;  %p2026_p9 = scmp.lt.s32.totalorder (%p3792_p8), %s2025_s11, 2 }
  0x70   : > { %2794 = vmatpush3.bf16.msra.mxu1 %v2793_v12  ;;  %v2795_v21 = vpack.c.bf16 %v339_v19, %v338_v18  ;;  %v323_v22 = vld [vmem:[#allocation6 + $0x118] sm:$0xff]  ;;  %v2767_v26 = vpack.c.bf16 %v309_v24, %v308_v23  ;;  %v292_v27 = vld [vmem:[#allocation6 + $0x20] sm:$0xff]  ;;  %v293_v28 = vld [vmem:[#allocation6 + $0x28] sm:$0xff] }
  0x71   : > { %v2797_v25 = vpack.c.bf16 %v323_v22, %v322_v20  ;;  %v340_v29 = vld [vmem:[#allocation6 + $0x1a0] sm:$0xff]  ;;  %v341_v30 = vld [vmem:[#allocation6 + $0x1a8] sm:$0xff]  ;;  %v2769_v33 = vpack.c.bf16 %v293_v28, %v292_v27  ;;  %v310_v35 = vld [vmem:[#allocation6 + $0xb0] sm:$0xff] }
  0x72   : > { %2796 = vmatprep.subr.bf16.mxu1 %v2795_v21  ;;  %v324_v31 = vld [vmem:[#allocation6 + $0x120] sm:$0xff]  ;;  %v325_v32 = vld [vmem:[#allocation6 + $0x128] sm:$0xff]  ;;  %2766 = vmatpush3.bf16.msra.mxu0 %v2765_v17  ;;  %v2799_v34 = vpack.c.bf16 %v341_v30, %v340_v29  ;;  %v311_v36 = vld [vmem:[#allocation6 + $0xb8] sm:$0xff] }
  0x73   : > { %v294_v37 = vld [vmem:[#allocation6 + $0x30] sm:$0xff]  ;;  %2768 = vmatprep.subr.bf16.mxu0 %v2767_v26  ;;  %v2801_v38 = vpack.c.bf16 %v325_v32, %v324_v31  ;;  %v2771_v39 = vpack.c.bf16 %v311_v36, %v310_v35  ;;  %v295_v40 = vld [vmem:[#allocation6 + $0x38] sm:$0xff]  ;;  %v312_v46 = vld [vmem:[#allocation6 + $0xc0] sm:$0xff] }
  0x74   : > { %2798 = vmatpush3.bf16.msra.mxu1 %v2797_v25  ;;  %v342_v41 = vld [vmem:[#allocation6 + $0x1b0] sm:$0xff]  ;;  %v343_v42 = vld [vmem:[#allocation6 + $0x1b8] sm:$0xff]  ;;  %v313_v47 = vld [vmem:[#allocation6 + $0xc8] sm:$0xff]  ;;  %v2773_v48 = vpack.c.bf16 %v295_v40, %v294_v37 }
  0x75   : > { %2800 = vmatprep.subr.bf16.mxu1 %v2799_v34  ;;  %v2803_v43 = vpack.c.bf16 %v343_v42, %v342_v41  ;;  %v326_v44 = vld [vmem:[#allocation6 + $0x130] sm:$0xff]  ;;  %v327_v45 = vld [vmem:[#allocation6 + $0x138] sm:$0xff]  ;;  %v344_v49 = vld [vmem:[#allocation6 + $0x1c0] sm:$0xff]  ;;  %v2775_v52 = vpack.c.bf16 %v313_v47, %v312_v46 }
  0x76   : > { %2770 = vmatpush3.bf16.msra.mxu0 %v2769_v33  ;;  %v345_v50 = vld [vmem:[#allocation6 + $0x1c8] sm:$0xff]  ;;  %v2805_v51 = vpack.c.bf16 %v327_v45, %v326_v44  ;;  %v296_v53 = vld [vmem:[#allocation6 + $0x40] sm:$0xff]  ;;  %v314_v58 = vld [vmem:[#allocation6 + $0xd0] sm:$0xff] }
  0x77   : > { %2772 = vmatprep.subr.bf16.mxu0 %v2771_v39  ;;  %v297_v54 = vld [vmem:[#allocation6 + $0x48] sm:$0xff]  ;;  %v328_v55 = vld [vmem:[#allocation6 + $0x140] sm:$0xff]  ;;  %v2807_v56 = vpack.c.bf16 %v345_v50, %v344_v49  ;;  %v315_v59 = vld [vmem:[#allocation6 + $0xd8] sm:$0xff] }
  0x78   : > { %2802 = vmatpush3.bf16.msra.mxu1 %v2801_v38  ;;  %v329_v57 = vld [vmem:[#allocation6 + $0x148] sm:$0xff]  ;;  %v346_v60 = vld [vmem:[#allocation6 + $0x1d0] sm:$0xff]  ;;  %v347_v61 = vld [vmem:[#allocation6 + $0x1d8] sm:$0xff]  ;;  %v2777_v62 = vpack.c.bf16 %v297_v54, %v296_v53  ;;  %v2779_v0 = vpack.c.bf16 %v315_v59, %v314_v58 }
  0x79   : > { %2804 = vmatprep.subr.bf16.mxu1 %v2803_v43  ;;  %v2809_v63 = vpack.c.bf16 %v329_v57, %v328_v55  ;;  %v298_v1 = vld [vmem:[#allocation6 + $0x50] sm:$0xff]  ;;  %v299_v2 = vld [vmem:[#allocation6 + $0x58] sm:$0xff]  ;;  %v2811_v4 = vpack.c.bf16 %v347_v61, %v346_v60  ;;  %v316_v6 = vld [vmem:[#allocation6 + $0xe0] sm:$0xff] }
  0x7a   : > { %2774 = vmatpush3.bf16.msra.mxu0 %v2773_v48  ;;  %v330_v3 = vld [vmem:[#allocation6 + $0x150] sm:$0xff]  ;;  %v331_v5 = vld [vmem:[#allocation6 + $0x158] sm:$0xff]  ;;  %v317_v7 = vld [vmem:[#allocation6 + $0xe8] sm:$0xff]  ;;  %v2781_v10 = vpack.c.bf16 %v299_v2, %v298_v1 }
  0x7b   : > { %2776 = vmatprep.subr.bf16.mxu0 %v2775_v52  ;;  %v348_v8 = vld [vmem:[#allocation6 + $0x1e0] sm:$0xff]  ;;  %v349_v9 = vld [vmem:[#allocation6 + $0x1e8] sm:$0xff]  ;;  %v2813_v13 = vpack.c.bf16 %v331_v5, %v330_v3  ;;  %v2783_v14 = vpack.c.bf16 %v317_v7, %v316_v6  ;;  %v318_v19 = vld [vmem:[#allocation6 + $0xf0] sm:$0xff] }
  0x7c   : > { %2806 = vmatpush3.bf16.msra.mxu1 %v2805_v51  ;;  %v300_v11 = vld [vmem:[#allocation6 + $0x60] sm:$0xff]  ;;  %v301_v12 = vld [vmem:[#allocation6 + $0x68] sm:$0xff]  ;;  %v2815_v18 = vpack.c.bf16 %v349_v9, %v348_v8  ;;  %v319_v20 = vld [vmem:[#allocation6 + $0xf8] sm:$0xff] }
  0x7d   : > { %2808 = vmatprep.subr.bf16.mxu1 %v2807_v56  ;;  %v332_v15 = vld [vmem:[#allocation6 + $0x160] sm:$0xff]  ;;  %v333_v16 = vld [vmem:[#allocation6 + $0x168] sm:$0xff]  ;;  %v227_v21 = vld [vmem:[%s3635_s18 + $0x18] sm:$0xff]  ;;  %v2785_v24 = vpack.c.bf16 %v301_v12, %v300_v11  ;;  %v2787_v26 = vpack.c.bf16 %v319_v20, %v318_v19 }
  0x7e   : > { %2778 = vmatpush3.bf16.msra.mxu0 %v2777_v62  ;;  %v225_v17 = vld [vmem:[%s3635_s18 + $0x8] sm:$0xff]  ;;  %v350_v22 = vld [vmem:[#allocation6 + $0x1f0] sm:$0xff]  ;;  %v351_v23 = vld [vmem:[#allocation6 + $0x1f8] sm:$0xff]  ;;  %941 = vmatprep.mubr.f32.mxu1 %v227_v21  ;;  %v2817_v25 = vpack.c.bf16 %v333_v16, %v332_v15 }
  0x7f   : > { %2780 = vmatprep.subr.bf16.mxu0 %v2779_v0  ;;  %866 = vmatprep.mubr.f32.mxu0 %v225_v17  ;;  %v302_v27 = vld [vmem:[#allocation6 + $0x70] sm:$0xff]  ;;  %v303_v28 = vld [vmem:[#allocation6 + $0x78] sm:$0xff]  ;;  %v2819_v30 = vpack.c.bf16 %v351_v23, %v350_v22  ;;  %v368_v32 = vld [vmem:[#allocation6 + $0x280] sm:$0xff] }
  0x80   : > { %2810 = vmatpush3.bf16.msra.mxu1 %v2809_v63  ;;  %v334_v29 = vld [vmem:[#allocation6 + $0x170] sm:$0xff]  ;;  %v335_v31 = vld [vmem:[#allocation6 + $0x178] sm:$0xff]  ;;  %v369_v33 = vld [vmem:[#allocation6 + $0x288] sm:$0xff]  ;;  %v2789_v36 = vpack.c.bf16 %v303_v28, %v302_v27 }
  0x81   : > { %2812 = vmatprep.subr.bf16.mxu1 %v2811_v4  ;;  %v400_v34 = vld [vmem:[#allocation6 + $0x380] sm:$0xff]  ;;  %v401_v35 = vld [vmem:[#allocation6 + $0x388] sm:$0xff]  ;;  %v2821_v37 = vpack.c.bf16 %v335_v31, %v334_v29  ;;  %v2823_v38 = vpack.c.bf16 %v369_v33, %v368_v32  ;;  %v370_v44 = vld [vmem:[#allocation6 + $0x290] sm:$0xff] }
  0x82   : > { %2782 = vmatpush3.bf16.msra.mxu0 %v2781_v10  ;;  %v352_v39 = vld [vmem:[#allocation6 + $0x200] sm:$0xff]  ;;  %v353_v40 = vld [vmem:[#allocation6 + $0x208] sm:$0xff]  ;;  %v2855_v42 = vpack.c.bf16 %v401_v35, %v400_v34  ;;  %v371_v45 = vld [vmem:[#allocation6 + $0x298] sm:$0xff] }
  0x83   : > { %2784 = vmatprep.subr.bf16.mxu0 %v2783_v14  ;;  %v384_v41 = vld [vmem:[#allocation6 + $0x300] sm:$0xff]  ;;  %v385_v43 = vld [vmem:[#allocation6 + $0x308] sm:$0xff]  ;;  %v402_v46 = vld [vmem:[#allocation6 + $0x390] sm:$0xff]  ;;  %v2825_v49 = vpack.c.bf16 %v353_v40, %v352_v39  ;;  %v2827_v52 = vpack.c.bf16 %v371_v45, %v370_v44 }
  0x84   : > { %2814 = vmatpush3.bf16.msra.mxu1 %v2813_v13  ;;  %v403_v47 = vld [vmem:[#allocation6 + $0x398] sm:$0xff]  ;;  %v224_v48 = vld [vmem:[%s3635_s18] sm:$0xff]  ;;  %v226_v50 = vld [vmem:[%s3635_s18 + $0x10] sm:$0xff]  ;;  %v2857_v51 = vpack.c.bf16 %v385_v43, %v384_v41 }
  0x85   : > { %2816 = vmatprep.subr.bf16.mxu1 %v2815_v18  ;;  %v354_v53 = vld [vmem:[#allocation6 + $0x210] sm:$0xff]  ;;  %v355_v54 = vld [vmem:[#allocation6 + $0x218] sm:$0xff]  ;;  %v2859_v56 = vpack.c.bf16 %v403_v47, %v402_v46  ;;  %v372_v58 = vld [vmem:[#allocation6 + $0x2a0] sm:$0xff] }
  0x86   : > { %2786 = vmatpush3.bf16.msra.mxu0 %v2785_v24  ;;  %v386_v55 = vld [vmem:[#allocation6 + $0x310] sm:$0xff]  ;;  %v387_v57 = vld [vmem:[#allocation6 + $0x318] sm:$0xff]  ;;  %v373_v59 = vld [vmem:[#allocation6 + $0x2a8] sm:$0xff]  ;;  %v2829_v62 = vpack.c.bf16 %v355_v54, %v354_v53 }
  0x87   : > { %2788 = vmatprep.subr.bf16.mxu0 %v2787_v26  ;;  %v404_v60 = vld [vmem:[#allocation6 + $0x3a0] sm:$0xff]  ;;  %v405_v61 = vld [vmem:[#allocation6 + $0x3a8] sm:$0xff]  ;;  %v2861_v63 = vpack.c.bf16 %v387_v57, %v386_v55  ;;  %v2831_v0 = vpack.c.bf16 %v373_v59, %v372_v58  ;;  %v374_v6 = vld [vmem:[#allocation6 + $0x2b0] sm:$0xff] }
  0x88   : > { %2818 = vmatpush3.bf16.msra.mxu1 %v2817_v25  ;;  %v356_v1 = vld [vmem:[#allocation6 + $0x220] sm:$0xff]  ;;  %v357_v2 = vld [vmem:[#allocation6 + $0x228] sm:$0xff]  ;;  %v2863_v4 = vpack.c.bf16 %v405_v61, %v404_v60  ;;  %v375_v7 = vld [vmem:[#allocation6 + $0x2b8] sm:$0xff] }
  0x89   : > { %2820 = vmatprep.subr.bf16.mxu1 %v2819_v30  ;;  %v388_v3 = vld [vmem:[#allocation6 + $0x320] sm:$0xff]  ;;  %v389_v5 = vld [vmem:[#allocation6 + $0x328] sm:$0xff]  ;;  %v406_v8 = vld [vmem:[#allocation6 + $0x3b0] sm:$0xff]  ;;  %v2833_v10 = vpack.c.bf16 %v357_v2, %v356_v1  ;;  %v2835_v15 = vpack.c.bf16 %v375_v7, %v374_v6 }
  0x8a   : > { %2790 = vmatpush3.bf16.msra.mxu0 %v2789_v36  ;;  %v407_v9 = vld [vmem:[#allocation6 + $0x3b8] sm:$0xff]  ;;  %v358_v11 = vld [vmem:[#allocation6 + $0x230] sm:$0xff]  ;;  %v2865_v14 = vpack.c.bf16 %v389_v5, %v388_v3  ;;  %v257_v17 = vld [vmem:[%s3635_s18 + $0x108] sm:$0xff] }
  0x8b   : > { %2824 = vmatprep.subr.bf16.mxu0 %v2823_v38  ;;  %v359_v12 = vld [vmem:[#allocation6 + $0x238] sm:$0xff]  ;;  %v390_v13 = vld [vmem:[#allocation6 + $0x330] sm:$0xff]  ;;  %v256_v18 = vld [vmem:[%s3635_s18 + $0x100] sm:$0xff]  ;;  %v2867_v19 = vpack.c.bf16 %v407_v9, %v406_v8 }
  0x8c   : > { %2822 = vmatpush3.bf16.msra.mxu1 %v2821_v37  ;;  %v391_v16 = vld [vmem:[#allocation6 + $0x338] sm:$0xff]  ;;  %v376_v20 = vld [vmem:[#allocation6 + $0x2c0] sm:$0xff]  ;;  %v377_v21 = vld [vmem:[#allocation6 + $0x2c8] sm:$0xff]  ;;  %v2837_v25 = vpack.c.bf16 %v359_v12, %v358_v11 }
  0x8d   : > { %2856 = vmatprep.subr.bf16.mxu1 %v2855_v42  ;;  %867 = vmatmul.mubr.f32.vlgmr.msra.gmra.mrb[0].mxu0 %v224_v48  ;;  %v259_v22 = vld [vmem:[%s3635_s18 + $0x118] sm:$0xff]  ;;  %v408_v23 = vld [vmem:[#allocation6 + $0x3c0] sm:$0xff]  ;;  %v409_v24 = vld [vmem:[#allocation6 + $0x3c8] sm:$0xff]  ;;  %v2869_v29 = vpack.c.bf16 %v391_v16, %v390_v13  ;;  %v2839_v30 = vpack.c.bf16 %v377_v21, %v376_v20 }
  0x8e   : > { %2826 = vmatpush3.bf16.msra.mxu0 %v2825_v49  ;;  %871 = vmatprep.mubr.f32.mxu0 %v257_v17  ;;  %v360_v26 = vld [vmem:[#allocation6 + $0x240] sm:$0xff]  ;;  %v361_v27 = vld [vmem:[#allocation6 + $0x248] sm:$0xff]  ;;  %v258_v28 = vld [vmem:[%s3635_s18 + $0x110] sm:$0xff]  ;;  %v2871_v34 = vpack.c.bf16 %v409_v24, %v408_v23 }
  0x8f   : > { %942 = vmatmul.mubr.f32.vlgmr.msra.gmra.mrb[0].mxu1 %v226_v50  ;;  %2828 = vmatprep.subr.bf16.mxu0 %v2827_v52  ;;  %v392_v31 = vld [vmem:[#allocation6 + $0x340] sm:$0xff]  ;;  %v393_v32 = vld [vmem:[#allocation6 + $0x348] sm:$0xff]  ;;  %v378_v35 = vld [vmem:[#allocation6 + $0x2d0] sm:$0xff]  ;;  %v2841_v40 = vpack.c.bf16 %v361_v27, %v360_v26 }
  0x90   : > { %2858 = vmatpush3.bf16.msra.mxu1 %v2857_v51  ;;  %946 = vmatprep.mubr.f32.mxu1 %v259_v22  ;;  %v229_v33 = vld [vmem:[%s3635_s18 + $0x28] sm:$0xff]  ;;  %v379_v36 = vld [vmem:[#allocation6 + $0x2d8] sm:$0xff]  ;;  %v410_v38 = vld [vmem:[#allocation6 + $0x3d0] sm:$0xff]  ;;  %v2873_v41 = vpack.c.bf16 %v393_v32, %v392_v31 }
  0x91   : > { %2860 = vmatprep.subr.bf16.mxu1 %v2859_v56  ;;  %872 = vmatmul.mubr.f32.gmra.mrb[2].mxu0 %v256_v18  ;;  %v231_v37 = vld [vmem:[%s3635_s18 + $0x38] sm:$0xff]  ;;  %v2843_v42 = vpack.c.bf16 %v379_v36, %v378_v35  ;;  %v362_v43 = vld [vmem:[#allocation6 + $0x250] sm:$0xff]  ;;  %v380_v48 = vld [vmem:[#allocation6 + $0x2e0] sm:$0xff] }
  0x92   : > { %2830 = vmatpush3.bf16.msra.mxu0 %v2829_v62  ;;  %v411_v39 = vld [vmem:[#allocation6 + $0x3d8] sm:$0xff]  ;;  %1016 = vmatprep.mubr.f32.mxu0 %v229_v33  ;;  %v394_v45 = vld [vmem:[#allocation6 + $0x350] sm:$0xff]  ;;  %v381_v49 = vld [vmem:[#allocation6 + $0x2e8] sm:$0xff] }
  0x93   : > { %2832 = vmatprep.subr.bf16.mxu0 %v2831_v0  ;;  %947 = vmatmul.mubr.f32.gmra.mrb[2].mxu1 %v258_v28  ;;  %v363_v44 = vld [vmem:[#allocation6 + $0x258] sm:$0xff]  ;;  %v2875_v46 = vpack.c.bf16 %v411_v39, %v410_v38  ;;  %v412_v50 = vld [vmem:[#allocation6 + $0x3e0] sm:$0xff]  ;;  %v413_v51 = vld [vmem:[#allocation6 + $0x3e8] sm:$0xff]  ;;  %v2847_v54 = vpack.c.bf16 %v381_v49, %v380_v48 }
  0x94   : > { %2862 = vmatpush3.bf16.msra.mxu1 %v2861_v63  ;;  %1091 = vmatprep.mubr.f32.mxu1 %v231_v37  ;;  %v395_v47 = vld [vmem:[#allocation6 + $0x358] sm:$0xff]  ;;  %v2845_v52 = vpack.c.bf16 %v363_v44, %v362_v43  ;;  %v364_v55 = vld [vmem:[#allocation6 + $0x260] sm:$0xff]  ;;  %v365_v56 = vld [vmem:[#allocation6 + $0x268] sm:$0xff]  ;;  %v2879_v58 = vpack.c.bf16 %v413_v51, %v412_v50 }
  0x95   : > { %2864 = vmatprep.subr.bf16.mxu1 %v2863_v4  ;;  %v2877_v53 = vpack.c.bf16 %v395_v47, %v394_v45  ;;  %v396_v57 = vld [vmem:[#allocation6 + $0x360] sm:$0xff]  ;;  %v397_v59 = vld [vmem:[#allocation6 + $0x368] sm:$0xff]  ;;  %v382_v60 = vld [vmem:[#allocation6 + $0x2f0] sm:$0xff]  ;;  %v2849_v0 = vpack.c.bf16 %v365_v56, %v364_v55 }
  0x96   : > { %2834 = vmatpush3.bf16.msra.mxu0 %v2833_v10  ;;  %v383_v61 = vld [vmem:[#allocation6 + $0x2f8] sm:$0xff]  ;;  %v414_v62 = vld [vmem:[#allocation6 + $0x3f0] sm:$0xff]  ;;  %v2881_v1 = vpack.c.bf16 %v397_v59, %v396_v57  ;;  %v432_v8 = vld [vmem:[#allocation6 + $0x480] sm:$0xff] }
  0x97   : > { %2836 = vmatprep.subr.bf16.mxu0 %v2835_v15  ;;  %v415_v63 = vld [vmem:[#allocation6 + $0x3f8] sm:$0xff]  ;;  %v2851_v2 = vpack.c.bf16 %v383_v61, %v382_v60  ;;  %v366_v3 = vld [vmem:[#allocation6 + $0x270] sm:$0xff]  ;;  %v433_v9 = vld [vmem:[#allocation6 + $0x488] sm:$0xff] }
  0x98   : > { %2866 = vmatpush3.bf16.msra.mxu1 %v2865_v14  ;;  %v367_v4 = vld [vmem:[#allocation6 + $0x278] sm:$0xff]  ;;  %v398_v5 = vld [vmem:[#allocation6 + $0x370] sm:$0xff]  ;;  %v2883_v6 = vpack.c.bf16 %v415_v63, %v414_v62  ;;  %v464_v10 = vld [vmem:[#allocation6 + $0x580] sm:$0xff]  ;;  %v2887_v14 = vpack.c.bf16 %v433_v9, %v432_v8 }
  0x99   : > { %2868 = vmatprep.subr.bf16.mxu1 %v2867_v19  ;;  %v399_v7 = vld [vmem:[#allocation6 + $0x378] sm:$0xff]  ;;  %v465_v11 = vld [vmem:[#allocation6 + $0x588] sm:$0xff]  ;;  %v2853_v12 = vpack.c.bf16 %v367_v4, %v366_v3  ;;  %v416_v15 = vld [vmem:[#allocation6 + $0x400] sm:$0xff] }
  0x9a   : > { %2838 = vmatpush3.bf16.msra.mxu0 %v2837_v25  ;;  %v2885_v13 = vpack.c.bf16 %v399_v7, %v398_v5  ;;  %v417_v16 = vld [vmem:[#allocation6 + $0x408] sm:$0xff]  ;;  %v228_v17 = vld [vmem:[%s3635_s18 + $0x20] sm:$0xff]  ;;  %v2919_v18 = vpack.c.bf16 %v465_v11, %v464_v10  ;;  %v230_v21 = vld [vmem:[%s3635_s18 + $0x30] sm:$0xff] }
  0x9b   : > { %2840 = vmatprep.subr.bf16.mxu0 %v2839_v30  ;;  %v448_v19 = vld [vmem:[#allocation6 + $0x500] sm:$0xff]  ;;  %v449_v20 = vld [vmem:[#allocation6 + $0x508] sm:$0xff]  ;;  %v434_v22 = vld [vmem:[#allocation6 + $0x490] sm:$0xff]  ;;  %v2889_v24 = vpack.c.bf16 %v417_v16, %v416_v15 }
  0x9c   : > { %2870 = vmatpush3.bf16.msra.mxu1 %v2869_v29  ;;  %v435_v23 = vld [vmem:[#allocation6 + $0x498] sm:$0xff]  ;;  %v261_v25 = vld [vmem:[%s3635_s18 + $0x128] sm:$0xff]  ;;  %v466_v26 = vld [vmem:[#allocation6 + $0x590] sm:$0xff]  ;;  %v2921_v28 = vpack.c.bf16 %v449_v20, %v448_v19 }
  0x9d   : > { %2872 = vmatprep.subr.bf16.mxu1 %v2871_v34  ;;  %v467_v27 = vld [vmem:[#allocation6 + $0x598] sm:$0xff]  ;;  %v418_v29 = vld [vmem:[#allocation6 + $0x410] sm:$0xff]  ;;  %v2891_v32 = vpack.c.bf16 %v435_v23, %v434_v22  ;;  %v436_v34 = vld [vmem:[#allocation6 + $0x4a0] sm:$0xff] }
  0x9e   : > { %2842 = vmatpush3.bf16.msra.mxu0 %v2841_v40  ;;  %v419_v30 = vld [vmem:[#allocation6 + $0x418] sm:$0xff]  ;;  %v450_v31 = vld [vmem:[#allocation6 + $0x510] sm:$0xff]  ;;  %v437_v35 = vld [vmem:[#allocation6 + $0x4a8] sm:$0xff]  ;;  %v2923_v37 = vpack.c.bf16 %v467_v27, %v466_v26 }
  0x9f   : > { %2844 = vmatprep.subr.bf16.mxu0 %v2843_v42  ;;  %v451_v33 = vld [vmem:[#allocation6 + $0x518] sm:$0xff]  ;;  %v468_v38 = vld [vmem:[#allocation6 + $0x5a0] sm:$0xff]  ;;  %v469_v39 = vld [vmem:[#allocation6 + $0x5a8] sm:$0xff]  ;;  %v2895_v44 = vpack.c.bf16 %v437_v35, %v436_v34 }
  0xa0   : > { %2874 = vmatpush3.bf16.msra.mxu1 %v2873_v41  ;;  %v263_v36 = vld [vmem:[%s3635_s18 + $0x138] sm:$0xff]  ;;  %v260_v40 = vld [vmem:[%s3635_s18 + $0x120] sm:$0xff]  ;;  %v2893_v41 = vpack.c.bf16 %v419_v30, %v418_v29  ;;  %v262_v42 = vld [vmem:[%s3635_s18 + $0x130] sm:$0xff]  ;;  %v2925_v43 = vpack.c.bf16 %v451_v33, %v450_v31  ;;  %v2927_v48 = vpack.c.bf16 %v469_v39, %v468_v38 }
  0xa1   : > { %2876 = vmatprep.subr.bf16.mxu1 %v2875_v46  ;;  %v420_v45 = vld [vmem:[#allocation6 + $0x420] sm:$0xff]  ;;  %v421_v46 = vld [vmem:[#allocation6 + $0x428] sm:$0xff]  ;;  %v438_v50 = vld [vmem:[#allocation6 + $0x4b0] sm:$0xff] }
  0xa2   : > { %2846 = vmatpush3.bf16.msra.mxu0 %v2845_v52  ;;  %v452_v47 = vld [vmem:[#allocation6 + $0x520] sm:$0xff]  ;;  %v453_v49 = vld [vmem:[#allocation6 + $0x528] sm:$0xff]  ;;  %v439_v51 = vld [vmem:[#allocation6 + $0x4b8] sm:$0xff]  ;;  %v2897_v55 = vpack.c.bf16 %v421_v46, %v420_v45 }
  0xa3   : > { %2848 = vmatprep.subr.bf16.mxu0 %v2847_v54  ;;  %v470_v52 = vld [vmem:[#allocation6 + $0x5b0] sm:$0xff]  ;;  %v233_v54 = vld [vmem:[%s3635_s18 + $0x48] sm:$0xff]  ;;  %v235_v56 = vld [vmem:[%s3635_s18 + $0x58] sm:$0xff]  ;;  %v2929_v57 = vpack.c.bf16 %v453_v49, %v452_v47 }
  0xa4   : > { %2878 = vmatpush3.bf16.msra.mxu1 %v2877_v53  ;;  %v471_v53 = vld [vmem:[#allocation6 + $0x5b8] sm:$0xff]  ;;  %v422_v59 = vld [vmem:[#allocation6 + $0x430] sm:$0xff]  ;;  %v473_v3 = vld [vmem:[#allocation6 + $0x5c8] sm:$0xff] }
  0xa5   : > { %2880 = vmatprep.subr.bf16.mxu1 %v2879_v58  ;;  %v2899_v58 = vpack.c.bf16 %v439_v51, %v438_v50  ;;  %v423_v60 = vld [vmem:[#allocation6 + $0x438] sm:$0xff]  ;;  %v454_v61 = vld [vmem:[#allocation6 + $0x530] sm:$0xff]  ;;  %v2931_v62 = vpack.c.bf16 %v471_v53, %v470_v52  ;;  %v424_v7 = vld [vmem:[#allocation6 + $0x440] sm:$0xff] }
  0xa6   : > { %2850 = vmatpush3.bf16.msra.mxu0 %v2849_v0  ;;  %v455_v63 = vld [vmem:[#allocation6 + $0x538] sm:$0xff]  ;;  %v440_v0 = vld [vmem:[#allocation6 + $0x4c0] sm:$0xff]  ;;  %v2901_v4 = vpack.c.bf16 %v423_v60, %v422_v59  ;;  %v425_v8 = vld [vmem:[#allocation6 + $0x448] sm:$0xff] }
  0xa7   : > { %2852 = vmatprep.subr.bf16.mxu0 %v2851_v2  ;;  %v472_v2 = vld [vmem:[#allocation6 + $0x5c0] sm:$0xff]  ;;  %v2933_v5 = vpack.c.bf16 %v455_v63, %v454_v61  ;;  %v457_v11 = vld [vmem:[#allocation6 + $0x548] sm:$0xff]  ;;  %v475_v15 = vld [vmem:[#allocation6 + $0x5d8] sm:$0xff]  ;;  %v2905_v16 = vpack.c.bf16 %v425_v8, %v424_v7 }
  0xa8   : > { %2882 = vmatpush3.bf16.msra.mxu1 %v2881_v1  ;;  %v441_v1 = vld [vmem:[#allocation6 + $0x4c8] sm:$0xff]  ;;  %v456_v9 = vld [vmem:[#allocation6 + $0x540] sm:$0xff]  ;;  %v2935_v10 = vpack.c.bf16 %v473_v3, %v472_v2  ;;  %v426_v19 = vld [vmem:[#allocation6 + $0x450] sm:$0xff] }
  0xa9   : > { %2884 = vmatprep.subr.bf16.mxu1 %v2883_v6  ;;  %v2903_v6 = vpack.c.bf16 %v441_v1, %v440_v0  ;;  %v427_v20 = vld [vmem:[#allocation6 + $0x458] sm:$0xff]  ;;  %v476_v26 = vld [vmem:[#allocation6 + $0x5e0] sm:$0xff]  ;;  %v477_v27 = vld [vmem:[#allocation6 + $0x5e8] sm:$0xff] }
  0xaa   : > { %2854 = vmatpush3.bf16.msra.mxu0 %v2853_v12  ;;  %v442_v12 = vld [vmem:[#allocation6 + $0x4d0] sm:$0xff]  ;;  %v459_v23 = vld [vmem:[#allocation6 + $0x558] sm:$0xff]  ;;  %v428_v31 = vld [vmem:[#allocation6 + $0x460] sm:$0xff]  ;;  %v2943_v34 = vpack.c.bf16 %v477_v27, %v476_v26 }
  0xab   : > { %2888 = vmatprep.subr.bf16.mxu0 %v2887_v14  ;;  %v474_v14 = vld [vmem:[#allocation6 + $0x5d0] sm:$0xff]  ;;  %v460_v33 = vld [vmem:[#allocation6 + $0x560] sm:$0xff]  ;;  %v461_v35 = vld [vmem:[#allocation6 + $0x568] sm:$0xff] }
  0xac   : > { %2886 = vmatpush3.bf16.msra.mxu1 %v2885_v13  ;;  %v443_v13 = vld [vmem:[#allocation6 + $0x4d8] sm:$0xff]  ;;  %v2939_v22 = vpack.c.bf16 %v475_v15, %v474_v14  ;;  %v478_v38 = vld [vmem:[#allocation6 + $0x5f0] sm:$0xff]  ;;  %v497_v49 = vld [vmem:[#allocation6 + $0x688] sm:$0xff] }
  0xad   : > { %2920 = vmatprep.subr.bf16.mxu1 %v2919_v18  ;;  %1017 = vmatmul.mubr.f32.vlgmr.msra.gmra.mrb[4].mxu0 %v228_v17  ;;  %v2937_v17 = vpack.c.bf16 %v457_v11, %v456_v9  ;;  %v2907_v18 = vpack.c.bf16 %v443_v13, %v442_v12  ;;  %v479_v39 = vld [vmem:[#allocation6 + $0x5f8] sm:$0xff]  ;;  %v462_v45 = vld [vmem:[#allocation6 + $0x570] sm:$0xff]  ;;  %v528_v50 = vld [vmem:[#allocation6 + $0x780] sm:$0xff] }
  0xae   : > { %2890 = vmatpush3.bf16.msra.mxu0 %v2889_v24  ;;  %1021 = vmatprep.mubr.f32.mxu0 %v261_v25  ;;  %v444_v24 = vld [vmem:[#allocation6 + $0x4e0] sm:$0xff]  ;;  %v445_v25 = vld [vmem:[#allocation6 + $0x4e8] sm:$0xff]  ;;  %v2947_v46 = vpack.c.bf16 %v479_v39, %v478_v38  ;;  %v463_v47 = vld [vmem:[#allocation6 + $0x578] sm:$0xff] }
  0xaf   : > { %1092 = vmatmul.mubr.f32.vlgmr.msra.gmra.mrb[4].mxu1 %v230_v21  ;;  %2892 = vmatprep.subr.bf16.mxu0 %v2891_v32  ;;  %v458_v21 = vld [vmem:[#allocation6 + $0x550] sm:$0xff]  ;;  %v2911_v30 = vpack.c.bf16 %v445_v25, %v444_v24  ;;  %v429_v32 = vld [vmem:[#allocation6 + $0x468] sm:$0xff]  ;;  %v2949_v53 = vpack.c.bf16 %v463_v47, %v462_v45  ;;  %v512_v59 = vld [vmem:[#allocation6 + $0x700] sm:$0xff] }
  0xb0   : > { %2922 = vmatpush3.bf16.msra.mxu1 %v2921_v28  ;;  %1096 = vmatprep.mubr.f32.mxu1 %v263_v36  ;;  %v2909_v28 = vpack.c.bf16 %v427_v20, %v426_v19  ;;  %v2941_v29 = vpack.c.bf16 %v459_v23, %v458_v21  ;;  %v446_v36 = vld [vmem:[#allocation6 + $0x4f0] sm:$0xff]  ;;  %v529_v51 = vld [vmem:[#allocation6 + $0x788] sm:$0xff]  ;;  %v499_v63 = vld [vmem:[#allocation6 + $0x698] sm:$0xff] }
  0xb1   : > { %1022 = vmatmul.mubr.f32.gmra.mrb[6].mxu0 %v260_v40  ;;  %2924 = vmatprep.subr.bf16.mxu1 %v2923_v37  ;;  %v447_v37 = vld [vmem:[#allocation6 + $0x4f8] sm:$0xff]  ;;  %v2913_v40 = vpack.c.bf16 %v429_v32, %v428_v31  ;;  %v513_v60 = vld [vmem:[#allocation6 + $0x708] sm:$0xff]  ;;  %v234_v61 = vld [vmem:[%s3635_s18 + $0x50] sm:$0xff] }
  0xb2   : > { %2894 = vmatpush3.bf16.msra.mxu0 %v2893_v41  ;;  %1166 = vmatprep.mubr.f32.mxu0 %v233_v54  ;;  %v2945_v41 = vpack.c.bf16 %v461_v35, %v460_v33  ;;  %v265_v1 = vld [vmem:[%s3635_s18 + $0x148] sm:$0xff]  ;;  %v530_v2 = vld [vmem:[#allocation6 + $0x790] sm:$0xff]  ;;  %v531_v3 = vld [vmem:[#allocation6 + $0x798] sm:$0xff] }
  0xb3   : > { %1097 = vmatmul.mubr.f32.gmra.mrb[6].mxu1 %v262_v42  ;;  %2896 = vmatprep.subr.bf16.mxu0 %v2895_v44  ;;  %v2915_v42 = vpack.c.bf16 %v447_v37, %v446_v36  ;;  %v431_v44 = vld [vmem:[#allocation6 + $0x478] sm:$0xff]  ;;  %v514_v7 = vld [vmem:[#allocation6 + $0x710] sm:$0xff]  ;;  %v501_v11 = vld [vmem:[#allocation6 + $0x6a8] sm:$0xff]  ;;  %v2987_v13 = vpack.c.bf16 %v531_v3, %v530_v2 }
  0xb4   : > { %2926 = vmatpush3.bf16.msra.mxu1 %v2925_v43  ;;  %1241 = vmatprep.mubr.f32.mxu1 %v235_v56  ;;  %v430_v43 = vld [vmem:[#allocation6 + $0x470] sm:$0xff]  ;;  %v481_v56 = vld [vmem:[#allocation6 + $0x608] sm:$0xff]  ;;  %v515_v9 = vld [vmem:[#allocation6 + $0x718] sm:$0xff] }
  0xb5   : > { %2928 = vmatprep.subr.bf16.mxu1 %v2927_v48  ;;  %v496_v48 = vld [vmem:[#allocation6 + $0x680] sm:$0xff]  ;;  %v2917_v52 = vpack.c.bf16 %v431_v44, %v430_v43  ;;  %v267_v12 = vld [vmem:[%s3635_s18 + $0x158] sm:$0xff]  ;;  %v533_v15 = vld [vmem:[#allocation6 + $0x7a8] sm:$0xff]  ;;  %v2989_v19 = vpack.c.bf16 %v515_v9, %v514_v7 }
  0xb6   : > { %2898 = vmatpush3.bf16.msra.mxu0 %v2897_v55  ;;  %v2951_v54 = vpack.c.bf16 %v497_v49, %v496_v48  ;;  %v480_v55 = vld [vmem:[#allocation6 + $0x600] sm:$0xff]  ;;  %v517_v25 = vld [vmem:[#allocation6 + $0x728] sm:$0xff]  ;;  %v502_v26 = vld [vmem:[#allocation6 + $0x6b0] sm:$0xff] }
  0xb7   : > { %2900 = vmatprep.subr.bf16.mxu0 %v2899_v58  ;;  %v2983_v58 = vpack.c.bf16 %v529_v51, %v528_v50  ;;  %v2953_v0 = vpack.c.bf16 %v481_v56, %v480_v55  ;;  %v532_v14 = vld [vmem:[#allocation6 + $0x7a0] sm:$0xff]  ;;  %v503_v27 = vld [vmem:[#allocation6 + $0x6b8] sm:$0xff]  ;;  %v486_v35 = vld [vmem:[#allocation6 + $0x630] sm:$0xff] }
  0xb8   : > { %2930 = vmatpush3.bf16.msra.mxu1 %v2929_v57  ;;  %v232_v57 = vld [vmem:[%s3635_s18 + $0x40] sm:$0xff]  ;;  %v2991_v24 = vpack.c.bf16 %v533_v15, %v532_v14  ;;  %v239_v32 = vld [vmem:[%s3635_s18 + $0x78] sm:$0xff]  ;;  %v518_v37 = vld [vmem:[#allocation6 + $0x730] sm:$0xff] }
  0xb9   : > { %2932 = vmatprep.subr.bf16.mxu1 %v2931_v62  ;;  %v498_v62 = vld [vmem:[#allocation6 + $0x690] sm:$0xff]  ;;  %v484_v21 = vld [vmem:[#allocation6 + $0x620] sm:$0xff]  ;;  %v487_v36 = vld [vmem:[#allocation6 + $0x638] sm:$0xff] }
  0xba   : > { %2902 = vmatpush3.bf16.msra.mxu0 %v2901_v4  ;;  %v2985_v4 = vpack.c.bf16 %v513_v60, %v512_v59  ;;  %v2955_v8 = vpack.c.bf16 %v499_v63, %v498_v62  ;;  %v516_v23 = vld [vmem:[#allocation6 + $0x720] sm:$0xff]  ;;  %v519_v39 = vld [vmem:[#allocation6 + $0x738] sm:$0xff]  ;;  %v537_v43 = vld [vmem:[#allocation6 + $0x7c8] sm:$0xff]  ;;  %v2965_v44 = vpack.c.bf16 %v487_v36, %v486_v35 }
  0xbb   : > { %2904 = vmatprep.subr.bf16.mxu0 %v2903_v6  ;;  %v483_v6 = vld [vmem:[#allocation6 + $0x618] sm:$0xff]  ;;  %v2993_v33 = vpack.c.bf16 %v517_v25, %v516_v23  ;;  %v2997_v45 = vpack.c.bf16 %v519_v39, %v518_v37  ;;  %v488_v47 = vld [vmem:[#allocation6 + $0x640] sm:$0xff]  ;;  %v489_v48 = vld [vmem:[#allocation6 + $0x648] sm:$0xff] }
  0xbc   : > { %2934 = vmatpush3.bf16.msra.mxu1 %v2933_v5  ;;  %v482_v5 = vld [vmem:[#allocation6 + $0x610] sm:$0xff]  ;;  %v520_v49 = vld [vmem:[#allocation6 + $0x740] sm:$0xff]  ;;  %v521_v51 = vld [vmem:[#allocation6 + $0x748] sm:$0xff]  ;;  %v2969_v56 = vpack.c.bf16 %v489_v48, %v488_v47 }
  0xbd   : > { %2936 = vmatprep.subr.bf16.mxu1 %v2935_v10  ;;  %v500_v10 = vld [vmem:[#allocation6 + $0x6a0] sm:$0xff]  ;;  %v539_v55 = vld [vmem:[#allocation6 + $0x7d8] sm:$0xff]  ;;  %v490_v59 = vld [vmem:[#allocation6 + $0x650] sm:$0xff] }
  0xbe   : > { %2906 = vmatpush3.bf16.msra.mxu0 %v2905_v16  ;;  %v264_v16 = vld [vmem:[%s3635_s18 + $0x140] sm:$0xff]  ;;  %v2959_v20 = vpack.c.bf16 %v501_v11, %v500_v10  ;;  %v491_v60 = vld [vmem:[#allocation6 + $0x658] sm:$0xff]  ;;  %v541_v3 = vld [vmem:[#allocation6 + $0x7e8] sm:$0xff] }
  0xbf   : > { %2908 = vmatprep.subr.bf16.mxu0 %v2907_v18  ;;  %v266_v18 = vld [vmem:[%s3635_s18 + $0x150] sm:$0xff]  ;;  %v523_v63 = vld [vmem:[#allocation6 + $0x758] sm:$0xff]  ;;  %v540_v2 = vld [vmem:[#allocation6 + $0x7e0] sm:$0xff] }
  0xc0   : > { %2938 = vmatpush3.bf16.msra.mxu1 %v2937_v17  ;;  %v2957_v17 = vpack.c.bf16 %v483_v6, %v482_v5  ;;  %v492_v7 = vld [vmem:[#allocation6 + $0x660] sm:$0xff]  ;;  %v3007_v10 = vpack.c.bf16 %v541_v3, %v540_v2  ;;  %v525_v11 = vld [vmem:[#allocation6 + $0x768] sm:$0xff]  ;;  %v542_v14 = vld [vmem:[#allocation6 + $0x7f0] sm:$0xff] }
  0xc1   : > { %2940 = vmatprep.subr.bf16.mxu1 %v2939_v22  ;;  %v485_v22 = vld [vmem:[#allocation6 + $0x628] sm:$0xff]  ;;  %v524_v9 = vld [vmem:[#allocation6 + $0x760] sm:$0xff]  ;;  %v543_v15 = vld [vmem:[#allocation6 + $0x7f8] sm:$0xff] }
  0xc2   : > { %2910 = vmatpush3.bf16.msra.mxu0 %v2909_v28  ;;  %v534_v28 = vld [vmem:[#allocation6 + $0x7b0] sm:$0xff]  ;;  %v2961_v31 = vpack.c.bf16 %v485_v22, %v484_v21  ;;  %v3011_v22 = vpack.c.bf16 %v543_v15, %v542_v14  ;;  %v527_v23 = vld [vmem:[#allocation6 + $0x778] sm:$0xff]  ;;  %v561_v25 = vld [vmem:[#allocation6 + $0x888] sm:$0xff] }
  0xc3   : > { %2912 = vmatprep.subr.bf16.mxu0 %v2911_v30  ;;  %v237_v30 = vld [vmem:[%s3635_s18 + $0x68] sm:$0xff]  ;;  %v526_v21 = vld [vmem:[#allocation6 + $0x770] sm:$0xff]  ;;  %v576_v35 = vld [vmem:[#allocation6 + $0x900] sm:$0xff] }
  0xc4   : > { %2942 = vmatpush3.bf16.msra.mxu1 %v2941_v29  ;;  %v535_v29 = vld [vmem:[#allocation6 + $0x7b8] sm:$0xff]  ;;  %v577_v36 = vld [vmem:[#allocation6 + $0x908] sm:$0xff]  ;;  %v238_v37 = vld [vmem:[%s3635_s18 + $0x70] sm:$0xff] }
  0xc5   : > { %2944 = vmatprep.subr.bf16.mxu1 %v2943_v34  ;;  %v2963_v34 = vpack.c.bf16 %v503_v27, %v502_v26  ;;  %v2995_v38 = vpack.c.bf16 %v535_v29, %v534_v28  ;;  %v592_v26 = vld [vmem:[#allocation6 + $0x980] sm:$0xff]  ;;  %v593_v27 = vld [vmem:[#allocation6 + $0x988] sm:$0xff]  ;;  %v3013_v29 = vpack.c.bf16 %v527_v23, %v526_v21  ;;  %v563_v39 = vld [vmem:[#allocation6 + $0x898] sm:$0xff] }
  0xc6   : > { %2914 = vmatpush3.bf16.msra.mxu0 %v2913_v40  ;;  %v504_v40 = vld [vmem:[#allocation6 + $0x6c0] sm:$0xff]  ;;  %v578_v47 = vld [vmem:[#allocation6 + $0x910] sm:$0xff]  ;;  %v567_v3 = vld [vmem:[#allocation6 + $0x8b8] sm:$0xff] }
  0xc7   : > { %2916 = vmatprep.subr.bf16.mxu0 %v2915_v42  ;;  %v536_v42 = vld [vmem:[#allocation6 + $0x7c0] sm:$0xff]  ;;  %v566_v2 = vld [vmem:[#allocation6 + $0x8b0] sm:$0xff]  ;;  %v583_v15 = vld [vmem:[#allocation6 + $0x938] sm:$0xff] }
  0xc8   : > { %2946 = vmatpush3.bf16.msra.mxu1 %v2945_v41  ;;  %v505_v41 = vld [vmem:[#allocation6 + $0x6c8] sm:$0xff]  ;;  %v2999_v50 = vpack.c.bf16 %v537_v43, %v536_v42  ;;  %v594_v42 = vld [vmem:[#allocation6 + $0x990] sm:$0xff]  ;;  %v595_v43 = vld [vmem:[#allocation6 + $0x998] sm:$0xff] }
  0xc9   : > { %2948 = vmatprep.subr.bf16.mxu1 %v2947_v46  ;;  %v2967_v46 = vpack.c.bf16 %v505_v41, %v504_v40  ;;  %v269_v41 = vld [vmem:[%s3635_s18 + $0x168] sm:$0xff]  ;;  %v552_v23 = vld [vmem:[#allocation6 + $0x840] sm:$0xff] }
  0xca   : > { %2918 = vmatpush3.bf16.msra.mxu0 %v2917_v52  ;;  %v506_v52 = vld [vmem:[#allocation6 + $0x6d0] sm:$0xff] }
  0xcb   : > { %2952 = vmatprep.subr.bf16.mxu0 %v2951_v54  ;;  %v538_v54 = vld [vmem:[#allocation6 + $0x7d0] sm:$0xff] }
  0xcc   : > { %2950 = vmatpush3.bf16.msra.mxu1 %v2949_v53  ;;  %v507_v53 = vld [vmem:[#allocation6 + $0x6d8] sm:$0xff]  ;;  %v3003_v62 = vpack.c.bf16 %v539_v55, %v538_v54  ;;  %v596_v54 = vld [vmem:[#allocation6 + $0x9a0] sm:$0xff]  ;;  %v597_v55 = vld [vmem:[#allocation6 + $0x9a8] sm:$0xff] }
  0xcd   : > { %2984 = vmatprep.subr.bf16.mxu1 %v2983_v58  ;;  %1167 = vmatmul.mubr.f32.vlgmr.msra.gmra.mrb[8].mxu0 %v232_v57  ;;  %v3001_v57 = vpack.c.bf16 %v521_v51, %v520_v49  ;;  %v2971_v58 = vpack.c.bf16 %v507_v53, %v506_v52  ;;  %v579_v49 = vld [vmem:[#allocation6 + $0x918] sm:$0xff]  ;;  %v565_v51 = vld [vmem:[#allocation6 + $0x8a8] sm:$0xff]  ;;  %v3051_v53 = vpack.c.bf16 %v595_v43, %v594_v42  ;;  %v604_v42 = vld [vmem:[#allocation6 + $0x9e0] sm:$0xff] }
  0xce   : > { %2954 = vmatpush3.bf16.msra.mxu0 %v2953_v0  ;;  %1171 = vmatprep.mubr.f32.mxu0 %v265_v1  ;;  %v508_v0 = vld [vmem:[#allocation6 + $0x6e0] sm:$0xff]  ;;  %v509_v1 = vld [vmem:[#allocation6 + $0x6e8] sm:$0xff]  ;;  %v271_v52 = vld [vmem:[%s3635_s18 + $0x178] sm:$0xff] }
  0xcf   : > { %1242 = vmatmul.mubr.f32.vlgmr.msra.gmra.mrb[8].mxu1 %v234_v61  ;;  %2956 = vmatprep.subr.bf16.mxu0 %v2955_v8  ;;  %v522_v61 = vld [vmem:[#allocation6 + $0x750] sm:$0xff]  ;;  %v2975_v6 = vpack.c.bf16 %v509_v1, %v508_v0  ;;  %v493_v8 = vld [vmem:[#allocation6 + $0x668] sm:$0xff]  ;;  %v3055_v0 = vpack.c.bf16 %v597_v55, %v596_v54  ;;  %v607_v55 = vld [vmem:[#allocation6 + $0x9f8] sm:$0xff] }
  0xd0   : > { %2986 = vmatpush3.bf16.msra.mxu1 %v2985_v4  ;;  %1246 = vmatprep.mubr.f32.mxu1 %v267_v12  ;;  %v2973_v4 = vpack.c.bf16 %v491_v60, %v490_v59  ;;  %v3005_v5 = vpack.c.bf16 %v523_v63, %v522_v61  ;;  %v510_v12 = vld [vmem:[#allocation6 + $0x6f0] sm:$0xff]  ;;  %v3053_v59 = vpack.c.bf16 %v579_v49, %v578_v47  ;;  %v548_v61 = vld [vmem:[#allocation6 + $0x820] sm:$0xff]  ;;  %v581_v1 = vld [vmem:[#allocation6 + $0x928] sm:$0xff] }
  0xd1   : > { %1172 = vmatmul.mubr.f32.gmra.mrb[10].mxu0 %v264_v16  ;;  %2988 = vmatprep.subr.bf16.mxu1 %v2987_v13  ;;  %v511_v13 = vld [vmem:[#allocation6 + $0x6f8] sm:$0xff]  ;;  %v2977_v16 = vpack.c.bf16 %v493_v8, %v492_v7  ;;  %v580_v63 = vld [vmem:[#allocation6 + $0x920] sm:$0xff]  ;;  %v605_v43 = vld [vmem:[#allocation6 + $0x9e8] sm:$0xff] }
  0xd2   : > { %2958 = vmatpush3.bf16.msra.mxu0 %v2957_v17  ;;  %1316 = vmatprep.mubr.f32.mxu0 %v237_v30  ;;  %v3009_v17 = vpack.c.bf16 %v525_v11, %v524_v9  ;;  %v243_v8 = vld [vmem:[%s3635_s18 + $0x98] sm:$0xff]  ;;  %v3057_v9 = vpack.c.bf16 %v581_v1, %v580_v63  ;;  %v550_v11 = vld [vmem:[#allocation6 + $0x830] sm:$0xff]  ;;  %v556_v47 = vld [vmem:[#allocation6 + $0x860] sm:$0xff] }
  0xd3   : > { %1247 = vmatmul.mubr.f32.gmra.mrb[10].mxu1 %v266_v18  ;;  %2960 = vmatprep.subr.bf16.mxu0 %v2959_v20  ;;  %v2979_v18 = vpack.c.bf16 %v511_v13, %v510_v12  ;;  %v495_v20 = vld [vmem:[#allocation6 + $0x678] sm:$0xff]  ;;  %v582_v13 = vld [vmem:[#allocation6 + $0x930] sm:$0xff]  ;;  %v588_v49 = vld [vmem:[#allocation6 + $0x960] sm:$0xff] }
  0xd4   : > { %2990 = vmatpush3.bf16.msra.mxu1 %v2989_v19  ;;  %1391 = vmatprep.mubr.f32.mxu1 %v239_v32  ;;  %v494_v19 = vld [vmem:[#allocation6 + $0x670] sm:$0xff]  ;;  %v545_v32 = vld [vmem:[#allocation6 + $0x808] sm:$0xff]  ;;  %v551_v12 = vld [vmem:[#allocation6 + $0x838] sm:$0xff]  ;;  %v3061_v21 = vpack.c.bf16 %v583_v15, %v582_v13 }
  0xd5   : > { %2992 = vmatprep.subr.bf16.mxu1 %v2991_v24  ;;  %v560_v24 = vld [vmem:[#allocation6 + $0x880] sm:$0xff]  ;;  %v2981_v28 = vpack.c.bf16 %v495_v20, %v494_v19  ;;  %v601_v19 = vld [vmem:[#allocation6 + $0x9c8] sm:$0xff]  ;;  %v3029_v20 = vpack.c.bf16 %v551_v12, %v550_v11  ;;  %v606_v54 = vld [vmem:[#allocation6 + $0x9f0] sm:$0xff] }
  0xd6   : > { %2962 = vmatpush3.bf16.msra.mxu0 %v2961_v31  ;;  %v3015_v30 = vpack.c.bf16 %v561_v25, %v560_v24  ;;  %v544_v31 = vld [vmem:[#allocation6 + $0x800] sm:$0xff]  ;;  %v553_v24 = vld [vmem:[#allocation6 + $0x848] sm:$0xff]  ;;  %v591_v63 = vld [vmem:[#allocation6 + $0x978] sm:$0xff] }
  0xd7   : > { %2964 = vmatprep.subr.bf16.mxu0 %v2963_v34  ;;  %v3047_v34 = vpack.c.bf16 %v593_v27, %v592_v26  ;;  %v3017_v40 = vpack.c.bf16 %v545_v32, %v544_v31  ;;  %v584_v25 = vld [vmem:[#allocation6 + $0x940] sm:$0xff]  ;;  %v585_v27 = vld [vmem:[#allocation6 + $0x948] sm:$0xff]  ;;  %v603_v31 = vld [vmem:[#allocation6 + $0x9d8] sm:$0xff]  ;;  %v3033_v32 = vpack.c.bf16 %v553_v24, %v552_v23 }
  0xd8   : > { %2994 = vmatpush3.bf16.msra.mxu1 %v2993_v33  ;;  %v236_v33 = vld [vmem:[%s3635_s18 + $0x60] sm:$0xff]  ;;  %v625_v1 = vld [vmem:[#allocation6 + $0xa88] sm:$0xff]  ;;  %v242_v13 = vld [vmem:[%s3635_s18 + $0x90] sm:$0xff] }
  0xd9   : > { %2996 = vmatprep.subr.bf16.mxu1 %v2995_v38  ;;  %v562_v38 = vld [vmem:[#allocation6 + $0x890] sm:$0xff]  ;;  %v640_v11 = vld [vmem:[#allocation6 + $0xb00] sm:$0xff]  ;;  %v641_v12 = vld [vmem:[#allocation6 + $0xb08] sm:$0xff] }
  0xda   : > { %2966 = vmatpush3.bf16.msra.mxu0 %v2965_v44  ;;  %v3049_v44 = vpack.c.bf16 %v577_v36, %v576_v35  ;;  %v3019_v48 = vpack.c.bf16 %v563_v39, %v562_v38  ;;  %v554_v35 = vld [vmem:[#allocation6 + $0x850] sm:$0xff]  ;;  %v555_v36 = vld [vmem:[#allocation6 + $0x858] sm:$0xff] }
  0xdb   : > { %2968 = vmatprep.subr.bf16.mxu0 %v2967_v46  ;;  %v547_v46 = vld [vmem:[#allocation6 + $0x818] sm:$0xff]  ;;  %v642_v23 = vld [vmem:[#allocation6 + $0xb10] sm:$0xff] }
  0xdc   : > { %2998 = vmatpush3.bf16.msra.mxu1 %v2997_v45  ;;  %v546_v45 = vld [vmem:[#allocation6 + $0x810] sm:$0xff]  ;;  %v587_v39 = vld [vmem:[#allocation6 + $0x958] sm:$0xff] }
  0xdd   : > { %3000 = vmatprep.subr.bf16.mxu1 %v2999_v50  ;;  %v564_v50 = vld [vmem:[#allocation6 + $0x8a0] sm:$0xff]  ;;  %v627_v15 = vld [vmem:[#allocation6 + $0xa98] sm:$0xff] }
  0xde   : > { %2970 = vmatpush3.bf16.msra.mxu0 %v2969_v56  ;;  %v268_v56 = vld [vmem:[%s3635_s18 + $0x160] sm:$0xff]  ;;  %v3023_v60 = vpack.c.bf16 %v565_v51, %v564_v50  ;;  %v3071_v50 = vpack.c.bf16 %v605_v43, %v604_v42  ;;  %v589_v51 = vld [vmem:[#allocation6 + $0x968] sm:$0xff]  ;;  %v630_v42 = vld [vmem:[#allocation6 + $0xab0] sm:$0xff] }
  0xdf   : > { %2972 = vmatprep.subr.bf16.mxu0 %v2971_v58  ;;  %v270_v58 = vld [vmem:[%s3635_s18 + $0x170] sm:$0xff]  ;;  %v631_v43 = vld [vmem:[#allocation6 + $0xab8] sm:$0xff] }
  0xe0   : > { %3002 = vmatpush3.bf16.msra.mxu1 %v3001_v57  ;;  %v3021_v57 = vpack.c.bf16 %v547_v46, %v546_v45 }
  0xe1   : > { %3004 = vmatprep.subr.bf16.mxu1 %v3003_v62  ;;  %v549_v62 = vld [vmem:[#allocation6 + $0x828] sm:$0xff] }
  0xe2   : > { %2974 = vmatpush3.bf16.msra.mxu0 %v2973_v4  ;;  %v598_v4 = vld [vmem:[#allocation6 + $0x9b0] sm:$0xff]  ;;  %v3025_v7 = vpack.c.bf16 %v549_v62, %v548_v61  ;;  %v3075_v62 = vpack.c.bf16 %v607_v55, %v606_v54  ;;  %v647_v55 = vld [vmem:[#allocation6 + $0xb38] sm:$0xff] }
  0xe3   : > { %2976 = vmatprep.subr.bf16.mxu0 %v2975_v6  ;;  %v241_v6 = vld [vmem:[%s3635_s18 + $0x88] sm:$0xff]  ;;  %v590_v61 = vld [vmem:[#allocation6 + $0x970] sm:$0xff] }
  0xe4   : > { %3006 = vmatpush3.bf16.msra.mxu1 %v3005_v5  ;;  %v599_v5 = vld [vmem:[#allocation6 + $0x9b8] sm:$0xff] }
  0xe5   : > { %3008 = vmatprep.subr.bf16.mxu1 %v3007_v10  ;;  %v3027_v10 = vpack.c.bf16 %v567_v3, %v566_v2  ;;  %v3059_v14 = vpack.c.bf16 %v599_v5, %v598_v4  ;;  %v656_v2 = vld [vmem:[#allocation6 + $0xb80] sm:$0xff]  ;;  %v657_v3 = vld [vmem:[#allocation6 + $0xb88] sm:$0xff]  ;;  %v3077_v5 = vpack.c.bf16 %v591_v63, %v590_v61 }
  0xe6   : > { %2978 = vmatpush3.bf16.msra.mxu0 %v2977_v16  ;;  %v568_v16 = vld [vmem:[#allocation6 + $0x8c0] sm:$0xff] }
  0xe7   : > { %2980 = vmatprep.subr.bf16.mxu0 %v2979_v18  ;;  %v600_v18 = vld [vmem:[#allocation6 + $0x9c0] sm:$0xff] }
  0xe8   : > { %3010 = vmatpush3.bf16.msra.mxu1 %v3009_v17  ;;  %v569_v17 = vld [vmem:[#allocation6 + $0x8c8] sm:$0xff]  ;;  %v3063_v26 = vpack.c.bf16 %v601_v19, %v600_v18  ;;  %v658_v18 = vld [vmem:[#allocation6 + $0xb90] sm:$0xff]  ;;  %v659_v19 = vld [vmem:[#allocation6 + $0xb98] sm:$0xff] }
  0xe9   : > { %3012 = vmatprep.subr.bf16.mxu1 %v3011_v22  ;;  %v3031_v22 = vpack.c.bf16 %v569_v17, %v568_v16  ;;  %v273_v17 = vld [vmem:[%s3635_s18 + $0x188] sm:$0xff]  ;;  %v616_v63 = vld [vmem:[#allocation6 + $0xa40] sm:$0xff] }
  0xea   : > { %2982 = vmatpush3.bf16.msra.mxu0 %v2981_v28  ;;  %v570_v28 = vld [vmem:[#allocation6 + $0x8d0] sm:$0xff] }
  0xeb   : > { %3016 = vmatprep.subr.bf16.mxu0 %v3015_v30  ;;  %v602_v30 = vld [vmem:[#allocation6 + $0x9d0] sm:$0xff] }
  0xec   : > { %3014 = vmatpush3.bf16.msra.mxu1 %v3013_v29  ;;  %v571_v29 = vld [vmem:[#allocation6 + $0x8d8] sm:$0xff]  ;;  %v3067_v38 = vpack.c.bf16 %v603_v31, %v602_v30  ;;  %v660_v30 = vld [vmem:[#allocation6 + $0xba0] sm:$0xff]  ;;  %v661_v31 = vld [vmem:[#allocation6 + $0xba8] sm:$0xff] }
  0xed   : > { %3048 = vmatprep.subr.bf16.mxu1 %v3047_v34  ;;  %1317 = vmatmul.mubr.f32.vlgmr.msra.gmra.mrb[12].mxu0 %v236_v33  ;;  %v3065_v33 = vpack.c.bf16 %v585_v27, %v584_v25  ;;  %v3035_v34 = vpack.c.bf16 %v571_v29, %v570_v28  ;;  %v643_v25 = vld [vmem:[#allocation6 + $0xb18] sm:$0xff]  ;;  %v629_v27 = vld [vmem:[#allocation6 + $0xaa8] sm:$0xff]  ;;  %v3115_v29 = vpack.c.bf16 %v659_v19, %v658_v18  ;;  %v668_v18 = vld [vmem:[#allocation6 + $0xbe0] sm:$0xff] }
  0xee   : > { %3018 = vmatpush3.bf16.msra.mxu0 %v3017_v40  ;;  %1321 = vmatprep.mubr.f32.mxu0 %v269_v41  ;;  %v572_v40 = vld [vmem:[#allocation6 + $0x8e0] sm:$0xff]  ;;  %v573_v41 = vld [vmem:[#allocation6 + $0x8e8] sm:$0xff]  ;;  %v275_v28 = vld [vmem:[%s3635_s18 + $0x198] sm:$0xff] }
  0xef   : > { %1392 = vmatmul.mubr.f32.vlgmr.msra.gmra.mrb[12].mxu1 %v238_v37  ;;  %3020 = vmatprep.subr.bf16.mxu0 %v3019_v48  ;;  %v586_v37 = vld [vmem:[#allocation6 + $0x950] sm:$0xff]  ;;  %v3039_v46 = vpack.c.bf16 %v573_v41, %v572_v40  ;;  %v557_v48 = vld [vmem:[#allocation6 + $0x868] sm:$0xff]  ;;  %v3119_v40 = vpack.c.bf16 %v661_v31, %v660_v30  ;;  %v671_v31 = vld [vmem:[#allocation6 + $0xbf8] sm:$0xff] }
  0xf0   : > { %3050 = vmatpush3.bf16.msra.mxu1 %v3049_v44  ;;  %1396 = vmatprep.mubr.f32.mxu1 %v271_v52  ;;  %v3037_v44 = vpack.c.bf16 %v555_v36, %v554_v35  ;;  %v3069_v45 = vpack.c.bf16 %v587_v39, %v586_v37  ;;  %v574_v52 = vld [vmem:[#allocation6 + $0x8f0] sm:$0xff]  ;;  %v3117_v35 = vpack.c.bf16 %v643_v25, %v642_v23  ;;  %v612_v37 = vld [vmem:[#allocation6 + $0xa20] sm:$0xff]  ;;  %v645_v41 = vld [vmem:[#allocation6 + $0xb28] sm:$0xff] }
  0xf1   : > { %1322 = vmatmul.mubr.f32.gmra.mrb[14].mxu0 %v268_v56  ;;  %3052 = vmatprep.subr.bf16.mxu1 %v3051_v53  ;;  %v575_v53 = vld [vmem:[#allocation6 + $0x8f8] sm:$0xff]  ;;  %v3041_v56 = vpack.c.bf16 %v557_v48, %v556_v47  ;;  %v644_v39 = vld [vmem:[#allocation6 + $0xb20] sm:$0xff]  ;;  %v669_v19 = vld [vmem:[#allocation6 + $0xbe8] sm:$0xff] }
  0xf2   : > { %3022 = vmatpush3.bf16.msra.mxu0 %v3021_v57  ;;  %1466 = vmatprep.mubr.f32.mxu0 %v241_v6  ;;  %v3073_v57 = vpack.c.bf16 %v589_v51, %v588_v49  ;;  %v247_v48 = vld [vmem:[%s3635_s18 + $0xb8] sm:$0xff]  ;;  %v3121_v49 = vpack.c.bf16 %v645_v41, %v644_v39  ;;  %v614_v51 = vld [vmem:[#allocation6 + $0xa30] sm:$0xff]  ;;  %v620_v23 = vld [vmem:[#allocation6 + $0xa60] sm:$0xff] }
  0xf3   : > { %1397 = vmatmul.mubr.f32.gmra.mrb[14].mxu1 %v270_v58  ;;  %3024 = vmatprep.subr.bf16.mxu0 %v3023_v60  ;;  %v3043_v58 = vpack.c.bf16 %v575_v53, %v574_v52  ;;  %v559_v60 = vld [vmem:[#allocation6 + $0x878] sm:$0xff]  ;;  %v646_v53 = vld [vmem:[#allocation6 + $0xb30] sm:$0xff]  ;;  %v652_v25 = vld [vmem:[#allocation6 + $0xb60] sm:$0xff] }
  0xf4   : > { %3054 = vmatpush3.bf16.msra.mxu1 %v3053_v59  ;;  %1541 = vmatprep.mubr.f32.mxu1 %v243_v8  ;;  %v558_v59 = vld [vmem:[#allocation6 + $0x870] sm:$0xff]  ;;  %v609_v8 = vld [vmem:[#allocation6 + $0xa08] sm:$0xff]  ;;  %v615_v52 = vld [vmem:[#allocation6 + $0xa38] sm:$0xff]  ;;  %v3125_v61 = vpack.c.bf16 %v647_v55, %v646_v53 }
  0xf5   : > { %3056 = vmatprep.subr.bf16.mxu1 %v3055_v0  ;;  %v624_v0 = vld [vmem:[#allocation6 + $0xa80] sm:$0xff]  ;;  %v3045_v4 = vpack.c.bf16 %v559_v60, %v558_v59  ;;  %v665_v59 = vld [vmem:[#allocation6 + $0xbc8] sm:$0xff]  ;;  %v3093_v60 = vpack.c.bf16 %v615_v52, %v614_v51  ;;  %v670_v30 = vld [vmem:[#allocation6 + $0xbf0] sm:$0xff] }
  0xf6   : > { %3026 = vmatpush3.bf16.msra.mxu0 %v3025_v7  ;;  %v3079_v6 = vpack.c.bf16 %v625_v1, %v624_v0  ;;  %v608_v7 = vld [vmem:[#allocation6 + $0xa00] sm:$0xff]  ;;  %v617_v0 = vld [vmem:[#allocation6 + $0xa48] sm:$0xff]  ;;  %v655_v39 = vld [vmem:[#allocation6 + $0xb78] sm:$0xff] }
  0xf7   : > { %3028 = vmatprep.subr.bf16.mxu0 %v3027_v10  ;;  %v3111_v10 = vpack.c.bf16 %v657_v3, %v656_v2  ;;  %v3081_v16 = vpack.c.bf16 %v609_v8, %v608_v7  ;;  %v648_v1 = vld [vmem:[#allocation6 + $0xb40] sm:$0xff]  ;;  %v649_v3 = vld [vmem:[#allocation6 + $0xb48] sm:$0xff]  ;;  %v667_v7 = vld [vmem:[#allocation6 + $0xbd8] sm:$0xff]  ;;  %v3097_v8 = vpack.c.bf16 %v617_v0, %v616_v63 }
  0xf8   : > { %3058 = vmatpush3.bf16.msra.mxu1 %v3057_v9  ;;  %v240_v9 = vld [vmem:[%s3635_s18 + $0x80] sm:$0xff]  ;;  %v689_v41 = vld [vmem:[#allocation6 + $0xc88] sm:$0xff]  ;;  %v246_v53 = vld [vmem:[%s3635_s18 + $0xb0] sm:$0xff] }
  0xf9   : > { %3060 = vmatprep.subr.bf16.mxu1 %v3059_v14  ;;  %v626_v14 = vld [vmem:[#allocation6 + $0xa90] sm:$0xff]  ;;  %v704_v51 = vld [vmem:[#allocation6 + $0xd00] sm:$0xff]  ;;  %v705_v52 = vld [vmem:[#allocation6 + $0xd08] sm:$0xff] }
  0xfa   : > { %3030 = vmatpush3.bf16.msra.mxu0 %v3029_v20  ;;  %v3113_v20 = vpack.c.bf16 %v641_v12, %v640_v11  ;;  %v3083_v24 = vpack.c.bf16 %v627_v15, %v626_v14  ;;  %v618_v11 = vld [vmem:[#allocation6 + $0xa50] sm:$0xff]  ;;  %v619_v12 = vld [vmem:[#allocation6 + $0xa58] sm:$0xff] }
  0xfb   : > { %3032 = vmatprep.subr.bf16.mxu0 %v3031_v22  ;;  %v611_v22 = vld [vmem:[#allocation6 + $0xa18] sm:$0xff]  ;;  %v706_v63 = vld [vmem:[#allocation6 + $0xd10] sm:$0xff] }
  0xfc   : > { %3062 = vmatpush3.bf16.msra.mxu1 %v3061_v21  ;;  %v610_v21 = vld [vmem:[#allocation6 + $0xa10] sm:$0xff]  ;;  %v651_v15 = vld [vmem:[#allocation6 + $0xb58] sm:$0xff] }
  0xfd   : > { %3064 = vmatprep.subr.bf16.mxu1 %v3063_v26  ;;  %v628_v26 = vld [vmem:[#allocation6 + $0xaa0] sm:$0xff]  ;;  %v691_v55 = vld [vmem:[#allocation6 + $0xc98] sm:$0xff] }
  0xfe   : > { %3034 = vmatpush3.bf16.msra.mxu0 %v3033_v32  ;;  %v272_v32 = vld [vmem:[%s3635_s18 + $0x180] sm:$0xff]  ;;  %v3087_v36 = vpack.c.bf16 %v629_v27, %v628_v26  ;;  %v3135_v26 = vpack.c.bf16 %v669_v19, %v668_v18  ;;  %v653_v27 = vld [vmem:[#allocation6 + $0xb68] sm:$0xff]  ;;  %v694_v18 = vld [vmem:[#allocation6 + $0xcb0] sm:$0xff] }
  0xff   : > { %3036 = vmatprep.subr.bf16.mxu0 %v3035_v34  ;;  %v274_v34 = vld [vmem:[%s3635_s18 + $0x190] sm:$0xff]  ;;  %v695_v19 = vld [vmem:[#allocation6 + $0xcb8] sm:$0xff] }
 0x100   : > { %3066 = vmatpush3.bf16.msra.mxu1 %v3065_v33  ;;  %v3085_v33 = vpack.c.bf16 %v611_v22, %v610_v21 }
 0x101   : > { %3068 = vmatprep.subr.bf16.mxu1 %v3067_v38  ;;  %v613_v38 = vld [vmem:[#allocation6 + $0xa28] sm:$0xff] }
 0x102   : > { %3038 = vmatpush3.bf16.msra.mxu0 %v3037_v44  ;;  %v662_v44 = vld [vmem:[#allocation6 + $0xbb0] sm:$0xff]  ;;  %v3089_v47 = vpack.c.bf16 %v613_v38, %v612_v37  ;;  %v3139_v38 = vpack.c.bf16 %v671_v31, %v670_v30  ;;  %v711_v31 = vld [vmem:[#allocation6 + $0xd38] sm:$0xff] }
 0x103   : > { %3040 = vmatprep.subr.bf16.mxu0 %v3039_v46  ;;  %v245_v46 = vld [vmem:[%s3635_s18 + $0xa8] sm:$0xff]  ;;  %v654_v37 = vld [vmem:[#allocation6 + $0xb70] sm:$0xff] }
 0x104   : > { %3070 = vmatpush3.bf16.msra.mxu1 %v3069_v45  ;;  %v663_v45 = vld [vmem:[#allocation6 + $0xbb8] sm:$0xff] }
 0x105   : > { %3072 = vmatprep.subr.bf16.mxu1 %v3071_v50  ;;  %v3091_v50 = vpack.c.bf16 %v631_v43, %v630_v42  ;;  %v3123_v54 = vpack.c.bf16 %v663_v45, %v662_v44  ;;  %v720_v42 = vld [vmem:[#allocation6 + $0xd80] sm:$0xff]  ;;  %v721_v43 = vld [vmem:[#allocation6 + $0xd88] sm:$0xff]  ;;  %v3141_v45 = vpack.c.bf16 %v655_v39, %v654_v37 }
 0x106   : > { %3042 = vmatpush3.bf16.msra.mxu0 %v3041_v56  ;;  %v632_v56 = vld [vmem:[#allocation6 + $0xac0] sm:$0xff] }
 0x107   : > { %3044 = vmatprep.subr.bf16.mxu0 %v3043_v58  ;;  %v664_v58 = vld [vmem:[#allocation6 + $0xbc0] sm:$0xff] }
 0x108   : > { %3074 = vmatpush3.bf16.msra.mxu1 %v3073_v57  ;;  %v633_v57 = vld [vmem:[#allocation6 + $0xac8] sm:$0xff]  ;;  %v3127_v2 = vpack.c.bf16 %v665_v59, %v664_v58  ;;  %v722_v58 = vld [vmem:[#allocation6 + $0xd90] sm:$0xff]  ;;  %v723_v59 = vld [vmem:[#allocation6 + $0xd98] sm:$0xff] }
 0x109   : > { %3076 = vmatprep.subr.bf16.mxu1 %v3075_v62  ;;  %v3095_v62 = vpack.c.bf16 %v633_v57, %v632_v56  ;;  %v277_v57 = vld [vmem:[%s3635_s18 + $0x1a8] sm:$0xff]  ;;  %v680_v39 = vld [vmem:[#allocation6 + $0xc40] sm:$0xff] }
 0x10a   : > { %3046 = vmatpush3.bf16.msra.mxu0 %v3045_v4  ;;  %v634_v4 = vld [vmem:[#allocation6 + $0xad0] sm:$0xff] }
 0x10b   : > { %3080 = vmatprep.subr.bf16.mxu0 %v3079_v6  ;;  %v666_v6 = vld [vmem:[#allocation6 + $0xbd0] sm:$0xff] }
 0x10c   : > { %3078 = vmatpush3.bf16.msra.mxu1 %v3077_v5  ;;  %v635_v5 = vld [vmem:[#allocation6 + $0xad8] sm:$0xff]  ;;  %v3131_v14 = vpack.c.bf16 %v667_v7, %v666_v6  ;;  %v724_v6 = vld [vmem:[#allocation6 + $0xda0] sm:$0xff]  ;;  %v725_v7 = vld [vmem:[#allocation6 + $0xda8] sm:$0xff] }
 0x10d   : > { %3112 = vmatprep.subr.bf16.mxu1 %v3111_v10  ;;  %1467 = vmatmul.mubr.f32.vlgmr.msra.gmra.mrb[16].mxu0 %v240_v9  ;;  %v3129_v9 = vpack.c.bf16 %v649_v3, %v648_v1  ;;  %v3099_v10 = vpack.c.bf16 %v635_v5, %v634_v4  ;;  %v707_v1 = vld [vmem:[#allocation6 + $0xd18] sm:$0xff]  ;;  %v693_v3 = vld [vmem:[#allocation6 + $0xca8] sm:$0xff]  ;;  %v3179_v5 = vpack.c.bf16 %v723_v59, %v722_v58  ;;  %v732_v58 = vld [vmem:[#allocation6 + $0xde0] sm:$0xff] }
 0x10e   : > { %3082 = vmatpush3.bf16.msra.mxu0 %v3081_v16  ;;  %1471 = vmatprep.mubr.f32.mxu0 %v273_v17  ;;  %v636_v16 = vld [vmem:[#allocation6 + $0xae0] sm:$0xff]  ;;  %v637_v17 = vld [vmem:[#allocation6 + $0xae8] sm:$0xff]  ;;  %v279_v4 = vld [vmem:[%s3635_s18 + $0x1b8] sm:$0xff] }
 0x10f   : > { %1542 = vmatmul.mubr.f32.vlgmr.msra.gmra.mrb[16].mxu1 %v242_v13  ;;  %3084 = vmatprep.subr.bf16.mxu0 %v3083_v24  ;;  %v650_v13 = vld [vmem:[#allocation6 + $0xb50] sm:$0xff]  ;;  %v3103_v22 = vpack.c.bf16 %v637_v17, %v636_v16  ;;  %v621_v24 = vld [vmem:[#allocation6 + $0xa68] sm:$0xff]  ;;  %v3183_v16 = vpack.c.bf16 %v725_v7, %v724_v6  ;;  %v735_v7 = vld [vmem:[#allocation6 + $0xdf8] sm:$0xff] }
 0x110   : > { %3114 = vmatpush3.bf16.msra.mxu1 %v3113_v20  ;;  %1546 = vmatprep.mubr.f32.mxu1 %v275_v28  ;;  %v3101_v20 = vpack.c.bf16 %v619_v12, %v618_v11  ;;  %v3133_v21 = vpack.c.bf16 %v651_v15, %v650_v13  ;;  %v638_v28 = vld [vmem:[#allocation6 + $0xaf0] sm:$0xff]  ;;  %v3181_v11 = vpack.c.bf16 %v707_v1, %v706_v63  ;;  %v676_v13 = vld [vmem:[#allocation6 + $0xc20] sm:$0xff]  ;;  %v709_v17 = vld [vmem:[#allocation6 + $0xd28] sm:$0xff] }
 0x111   : > { %1472 = vmatmul.mubr.f32.gmra.mrb[18].mxu0 %v272_v32  ;;  %3116 = vmatprep.subr.bf16.mxu1 %v3115_v29  ;;  %v639_v29 = vld [vmem:[#allocation6 + $0xaf8] sm:$0xff]  ;;  %v3105_v32 = vpack.c.bf16 %v621_v24, %v620_v23  ;;  %v708_v15 = vld [vmem:[#allocation6 + $0xd20] sm:$0xff]  ;;  %v733_v59 = vld [vmem:[#allocation6 + $0xde8] sm:$0xff] }
 0x112   : > { %3086 = vmatpush3.bf16.msra.mxu0 %v3085_v33  ;;  %1616 = vmatprep.mubr.f32.mxu0 %v245_v46  ;;  %v3137_v33 = vpack.c.bf16 %v653_v27, %v652_v25  ;;  %v251_v24 = vld [vmem:[%s3635_s18 + $0xd8] sm:$0xff]  ;;  %v3185_v25 = vpack.c.bf16 %v709_v17, %v708_v15  ;;  %v678_v27 = vld [vmem:[#allocation6 + $0xc30] sm:$0xff]  ;;  %v684_v63 = vld [vmem:[#allocation6 + $0xc60] sm:$0xff] }
 0x113   : > { %1547 = vmatmul.mubr.f32.gmra.mrb[18].mxu1 %v274_v34  ;;  %3088 = vmatprep.subr.bf16.mxu0 %v3087_v36  ;;  %v3107_v34 = vpack.c.bf16 %v639_v29, %v638_v28  ;;  %v623_v36 = vld [vmem:[#allocation6 + $0xa78] sm:$0xff]  ;;  %v710_v29 = vld [vmem:[#allocation6 + $0xd30] sm:$0xff]  ;;  %v716_v1 = vld [vmem:[#allocation6 + $0xd60] sm:$0xff] }
 0x114   : > { %3118 = vmatpush3.bf16.msra.mxu1 %v3117_v35  ;;  %1691 = vmatprep.mubr.f32.mxu1 %v247_v48  ;;  %v622_v35 = vld [vmem:[#allocation6 + $0xa70] sm:$0xff]  ;;  %v673_v48 = vld [vmem:[#allocation6 + $0xc08] sm:$0xff]  ;;  %v679_v28 = vld [vmem:[#allocation6 + $0xc38] sm:$0xff]  ;;  %v3189_v37 = vpack.c.bf16 %v711_v31, %v710_v29 }
 0x115   : > { %3120 = vmatprep.subr.bf16.mxu1 %v3119_v40  ;;  %v688_v40 = vld [vmem:[#allocation6 + $0xc80] sm:$0xff]  ;;  %v3109_v44 = vpack.c.bf16 %v623_v36, %v622_v35  ;;  %v729_v35 = vld [vmem:[#allocation6 + $0xdc8] sm:$0xff]  ;;  %v3157_v36 = vpack.c.bf16 %v679_v28, %v678_v27  ;;  %v734_v6 = vld [vmem:[#allocation6 + $0xdf0] sm:$0xff] }
 0x116   : > { %3090 = vmatpush3.bf16.msra.mxu0 %v3089_v47  ;;  %v3143_v46 = vpack.c.bf16 %v689_v41, %v688_v40  ;;  %v672_v47 = vld [vmem:[#allocation6 + $0xc00] sm:$0xff]  ;;  %v681_v40 = vld [vmem:[#allocation6 + $0xc48] sm:$0xff]  ;;  %v719_v15 = vld [vmem:[#allocation6 + $0xd78] sm:$0xff] }
 0x117   : > { %3092 = vmatprep.subr.bf16.mxu0 %v3091_v50  ;;  %v3175_v50 = vpack.c.bf16 %v721_v43, %v720_v42  ;;  %v3145_v56 = vpack.c.bf16 %v673_v48, %v672_v47  ;;  %v712_v41 = vld [vmem:[#allocation6 + $0xd40] sm:$0xff]  ;;  %v713_v43 = vld [vmem:[#allocation6 + $0xd48] sm:$0xff]  ;;  %v731_v47 = vld [vmem:[#allocation6 + $0xdd8] sm:$0xff]  ;;  %v3161_v48 = vpack.c.bf16 %v681_v40, %v680_v39 }
 0x118   : > { %3122 = vmatpush3.bf16.msra.mxu1 %v3121_v49  ;;  %v244_v49 = vld [vmem:[%s3635_s18 + $0xa0] sm:$0xff]  ;;  %v753_v17 = vld [vmem:[#allocation6 + $0xe88] sm:$0xff]  ;;  %v250_v29 = vld [vmem:[%s3635_s18 + $0xd0] sm:$0xff] }
 0x119   : > { %3124 = vmatprep.subr.bf16.mxu1 %v3123_v54  ;;  %v690_v54 = vld [vmem:[#allocation6 + $0xc90] sm:$0xff]  ;;  %v768_v27 = vld [vmem:[#allocation6 + $0xf00] sm:$0xff]  ;;  %v769_v28 = vld [vmem:[#allocation6 + $0xf08] sm:$0xff] }
 0x11a   : > { %3094 = vmatpush3.bf16.msra.mxu0 %v3093_v60  ;;  %v3177_v60 = vpack.c.bf16 %v705_v52, %v704_v51  ;;  %v3147_v0 = vpack.c.bf16 %v691_v55, %v690_v54  ;;  %v682_v51 = vld [vmem:[#allocation6 + $0xc50] sm:$0xff]  ;;  %v683_v52 = vld [vmem:[#allocation6 + $0xc58] sm:$0xff] }
 0x11b   : > { %3096 = vmatprep.subr.bf16.mxu0 %v3095_v62  ;;  %v675_v62 = vld [vmem:[#allocation6 + $0xc18] sm:$0xff]  ;;  %v770_v39 = vld [vmem:[#allocation6 + $0xf10] sm:$0xff] }
 0x11c   : > { %3126 = vmatpush3.bf16.msra.mxu1 %v3125_v61  ;;  %v674_v61 = vld [vmem:[#allocation6 + $0xc10] sm:$0xff]  ;;  %v715_v55 = vld [vmem:[#allocation6 + $0xd58] sm:$0xff] }
 0x11d   : > { %3128 = vmatprep.subr.bf16.mxu1 %v3127_v2  ;;  %v692_v2 = vld [vmem:[#allocation6 + $0xca0] sm:$0xff]  ;;  %v755_v31 = vld [vmem:[#allocation6 + $0xe98] sm:$0xff] }
 0x11e   : > { %3098 = vmatpush3.bf16.msra.mxu0 %v3097_v8  ;;  %v276_v8 = vld [vmem:[%s3635_s18 + $0x1a0] sm:$0xff]  ;;  %v3151_v12 = vpack.c.bf16 %v693_v3, %v692_v2  ;;  %v3199_v2 = vpack.c.bf16 %v733_v59, %v732_v58  ;;  %v717_v3 = vld [vmem:[#allocation6 + $0xd68] sm:$0xff]  ;;  %v758_v58 = vld [vmem:[#allocation6 + $0xeb0] sm:$0xff] }
 0x11f   : > { %3100 = vmatprep.subr.bf16.mxu0 %v3099_v10  ;;  %v278_v10 = vld [vmem:[%s3635_s18 + $0x1b0] sm:$0xff]  ;;  %v759_v59 = vld [vmem:[#allocation6 + $0xeb8] sm:$0xff] }
 0x120   : > { %3130 = vmatpush3.bf16.msra.mxu1 %v3129_v9  ;;  %v3149_v9 = vpack.c.bf16 %v675_v62, %v674_v61 }
 0x121   : > { %3132 = vmatprep.subr.bf16.mxu1 %v3131_v14  ;;  %v677_v14 = vld [vmem:[#allocation6 + $0xc28] sm:$0xff] }
 0x122   : > { %3102 = vmatpush3.bf16.msra.mxu0 %v3101_v20  ;;  %v726_v20 = vld [vmem:[#allocation6 + $0xdb0] sm:$0xff]  ;;  %v3153_v23 = vpack.c.bf16 %v677_v14, %v676_v13  ;;  %v3203_v14 = vpack.c.bf16 %v735_v7, %v734_v6  ;;  %v775_v7 = vld [vmem:[#allocation6 + $0xf38] sm:$0xff] }
 0x123   : > { %3104 = vmatprep.subr.bf16.mxu0 %v3103_v22  ;;  %v249_v22 = vld [vmem:[%s3635_s18 + $0xc8] sm:$0xff]  ;;  %v718_v13 = vld [vmem:[#allocation6 + $0xd70] sm:$0xff] }
 0x124   : > { %3134 = vmatpush3.bf16.msra.mxu1 %v3133_v21  ;;  %v727_v21 = vld [vmem:[#allocation6 + $0xdb8] sm:$0xff] }
 0x125   : > { %3136 = vmatprep.subr.bf16.mxu1 %v3135_v26  ;;  %v3155_v26 = vpack.c.bf16 %v695_v19, %v694_v18  ;;  %v3187_v30 = vpack.c.bf16 %v727_v21, %v726_v20  ;;  %v784_v18 = vld [vmem:[#allocation6 + $0xf80] sm:$0xff]  ;;  %v785_v19 = vld [vmem:[#allocation6 + $0xf88] sm:$0xff]  ;;  %v3205_v21 = vpack.c.bf16 %v719_v15, %v718_v13 }
 0x126   : > { %3106 = vmatpush3.bf16.msra.mxu0 %v3105_v32  ;;  %v696_v32 = vld [vmem:[#allocation6 + $0xcc0] sm:$0xff] }
 0x127   : > { %3108 = vmatprep.subr.bf16.mxu0 %v3107_v34  ;;  %v728_v34 = vld [vmem:[#allocation6 + $0xdc0] sm:$0xff] }
 0x128   : > { %3138 = vmatpush3.bf16.msra.mxu1 %v3137_v33  ;;  %v697_v33 = vld [vmem:[#allocation6 + $0xcc8] sm:$0xff]  ;;  %v3191_v42 = vpack.c.bf16 %v729_v35, %v728_v34  ;;  %v786_v34 = vld [vmem:[#allocation6 + $0xf90] sm:$0xff]  ;;  %v787_v35 = vld [vmem:[#allocation6 + $0xf98] sm:$0xff] }
 0x129   : > { %3140 = vmatprep.subr.bf16.mxu1 %v3139_v38  ;;  %v3159_v38 = vpack.c.bf16 %v697_v33, %v696_v32  ;;  %v281_v33 = vld [vmem:[%s3635_s18 + $0x1c8] sm:$0xff]  ;;  %v744_v15 = vld [vmem:[#allocation6 + $0xe40] sm:$0xff] }
 0x12a   : > { %3110 = vmatpush3.bf16.msra.mxu0 %v3109_v44  ;;  %v698_v44 = vld [vmem:[#allocation6 + $0xcd0] sm:$0xff] }
 0x12b   : > { %3144 = vmatprep.subr.bf16.mxu0 %v3143_v46  ;;  %v730_v46 = vld [vmem:[#allocation6 + $0xdd0] sm:$0xff] }
 0x12c   : > { %3142 = vmatpush3.bf16.msra.mxu1 %v3141_v45  ;;  %v699_v45 = vld [vmem:[#allocation6 + $0xcd8] sm:$0xff]  ;;  %v3195_v54 = vpack.c.bf16 %v731_v47, %v730_v46  ;;  %v788_v46 = vld [vmem:[#allocation6 + $0xfa0] sm:$0xff]  ;;  %v789_v47 = vld [vmem:[#allocation6 + $0xfa8] sm:$0xff] }
 0x12d   : > { %3176 = vmatprep.subr.bf16.mxu1 %v3175_v50  ;;  %1617 = vmatmul.mubr.f32.vlgmr.msra.gmra.mrb[20].mxu0 %v244_v49  ;;  %v3193_v49 = vpack.c.bf16 %v713_v43, %v712_v41  ;;  %v3163_v50 = vpack.c.bf16 %v699_v45, %v698_v44  ;;  %v771_v41 = vld [vmem:[#allocation6 + $0xf18] sm:$0xff]  ;;  %v757_v43 = vld [vmem:[#allocation6 + $0xea8] sm:$0xff]  ;;  %v3243_v45 = vpack.c.bf16 %v787_v35, %v786_v34  ;;  %v796_v34 = vld [vmem:[#allocation6 + $0xfe0] sm:$0xff] }
 0x12e   : > { %3146 = vmatpush3.bf16.msra.mxu0 %v3145_v56  ;;  %1621 = vmatprep.mubr.f32.mxu0 %v277_v57  ;;  %v700_v56 = vld [vmem:[#allocation6 + $0xce0] sm:$0xff]  ;;  %v701_v57 = vld [vmem:[#allocation6 + $0xce8] sm:$0xff]  ;;  %v283_v44 = vld [vmem:[%s3635_s18 + $0x1d8] sm:$0xff] }
 0x12f   : > { %1692 = vmatmul.mubr.f32.vlgmr.msra.gmra.mrb[20].mxu1 %v246_v53  ;;  %3148 = vmatprep.subr.bf16.mxu0 %v3147_v0  ;;  %v714_v53 = vld [vmem:[#allocation6 + $0xd50] sm:$0xff]  ;;  %v3167_v62 = vpack.c.bf16 %v701_v57, %v700_v56  ;;  %v685_v0 = vld [vmem:[#allocation6 + $0xc68] sm:$0xff]  ;;  %v3247_v56 = vpack.c.bf16 %v789_v47, %v788_v46  ;;  %v767_v46 = vld [vmem:[#allocation6 + $0xef8] sm:$0xff]  ;;  %v801_v47 = vstv %s3703_s24 }
 0x130   : > { %3178 = vmatpush3.bf16.msra.mxu1 %v3177_v60  ;;  %1696 = vmatprep.mubr.f32.mxu1 %v279_v4  ;;  %v3165_v60 = vpack.c.bf16 %v683_v52, %v682_v51  ;;  %v3197_v61 = vpack.c.bf16 %v715_v55, %v714_v53  ;;  %v702_v4 = vld [vmem:[#allocation6 + $0xcf0] sm:$0xff]  ;;  %v3245_v51 = vpack.c.bf16 %v771_v41, %v770_v39  ;;  %v740_v53 = vld [vmem:[#allocation6 + $0xe20] sm:$0xff]  ;;  %v773_v57 = vld [vmem:[#allocation6 + $0xf28] sm:$0xff] }
 0x131   : > { %1622 = vmatmul.mubr.f32.gmra.mrb[22].mxu0 %v276_v8  ;;  %3180 = vmatprep.subr.bf16.mxu1 %v3179_v5  ;;  %v703_v5 = vld [vmem:[#allocation6 + $0xcf8] sm:$0xff]  ;;  %v3169_v8 = vpack.c.bf16 %v685_v0, %v684_v63  ;;  %v772_v55 = vld [vmem:[#allocation6 + $0xf20] sm:$0xff]  ;;  %v797_v35 = vld [vmem:[#allocation6 + $0xfe8] sm:$0xff] }
 0x132   : > { %3150 = vmatpush3.bf16.msra.mxu0 %v3149_v9  ;;  %1766 = vmatprep.mubr.f32.mxu0 %v249_v22  ;;  %v3201_v9 = vpack.c.bf16 %v717_v3, %v716_v1  ;;  %v255_v0 = vld [vmem:[%s3635_s18 + $0xf8] sm:$0xff]  ;;  %v3249_v1 = vpack.c.bf16 %v773_v57, %v772_v55  ;;  %v742_v3 = vld [vmem:[#allocation6 + $0xe30] sm:$0xff]  ;;  %v748_v39 = vld [vmem:[#allocation6 + $0xe60] sm:$0xff] }
 0x133   : > { %1697 = vmatmul.mubr.f32.gmra.mrb[22].mxu1 %v278_v10  ;;  %3152 = vmatprep.subr.bf16.mxu0 %v3151_v12  ;;  %v3171_v10 = vpack.c.bf16 %v703_v5, %v702_v4  ;;  %v687_v12 = vld [vmem:[#allocation6 + $0xc78] sm:$0xff]  ;;  %v774_v5 = vld [vmem:[#allocation6 + $0xf30] sm:$0xff]  ;;  %v780_v41 = vld [vmem:[#allocation6 + $0xf60] sm:$0xff] }
 0x134   : > { %3182 = vmatpush3.bf16.msra.mxu1 %v3181_v11  ;;  %1841 = vmatprep.mubr.f32.mxu1 %v251_v24  ;;  %v686_v11 = vld [vmem:[#allocation6 + $0xc70] sm:$0xff]  ;;  %v737_v24 = vld [vmem:[#allocation6 + $0xe08] sm:$0xff]  ;;  %v743_v4 = vld [vmem:[#allocation6 + $0xe38] sm:$0xff]  ;;  %v3253_v13 = vpack.c.bf16 %v775_v7, %v774_v5 }
 0x135   : > { %3184 = vmatprep.subr.bf16.mxu1 %v3183_v16  ;;  %v752_v16 = vld [vmem:[#allocation6 + $0xe80] sm:$0xff]  ;;  %v3173_v20 = vpack.c.bf16 %v687_v12, %v686_v11  ;;  %v793_v11 = vld [vmem:[#allocation6 + $0xfc8] sm:$0xff]  ;;  %v3221_v12 = vpack.c.bf16 %v743_v4, %v742_v3  ;;  %v254_v7 = vld [vmem:[%s3635_s18 + $0xf0] sm:$0xff] }
 0x136   : > { %3154 = vmatpush3.bf16.msra.mxu0 %v3153_v23  ;;  %v3207_v22 = vpack.c.bf16 %v753_v17, %v752_v16  ;;  %v736_v23 = vld [vmem:[#allocation6 + $0xe00] sm:$0xff]  ;;  %v745_v16 = vld [vmem:[#allocation6 + $0xe48] sm:$0xff] }
 0x137   : > { %3156 = vmatprep.subr.bf16.mxu0 %v3155_v26  ;;  %v3239_v26 = vpack.c.bf16 %v785_v19, %v784_v18  ;;  %v3209_v32 = vpack.c.bf16 %v737_v24, %v736_v23  ;;  %v776_v17 = vld [vmem:[#allocation6 + $0xf40] sm:$0xff]  ;;  %v777_v19 = vld [vmem:[#allocation6 + $0xf48] sm:$0xff]  ;;  %v795_v23 = vld [vmem:[#allocation6 + $0xfd8] sm:$0xff]  ;;  %v3225_v24 = vpack.c.bf16 %v745_v16, %v744_v15 }
 0x138   : > { %3186 = vmatpush3.bf16.msra.mxu1 %v3185_v25  ;;  %v248_v25 = vld [vmem:[%s3635_s18 + $0xc0] sm:$0xff]  ;;  %v286_v15 = vld [vmem:[%s3635_s18 + $0x1f0] sm:$0xff] }
 0x139   : > { %3188 = vmatprep.subr.bf16.mxu1 %v3187_v30  ;;  %v754_v30 = vld [vmem:[#allocation6 + $0xe90] sm:$0xff]  ;;  %v252_v5 = vld [vmem:[%s3635_s18 + $0xe0] sm:$0xff] }
 0x13a   : > { %3158 = vmatpush3.bf16.msra.mxu0 %v3157_v36  ;;  %v3241_v36 = vpack.c.bf16 %v769_v28, %v768_v27  ;;  %v3211_v40 = vpack.c.bf16 %v755_v31, %v754_v30  ;;  %v746_v27 = vld [vmem:[#allocation6 + $0xe50] sm:$0xff]  ;;  %v747_v28 = vld [vmem:[#allocation6 + $0xe58] sm:$0xff] }
 0x13b   : > { %3160 = vmatprep.subr.bf16.mxu0 %v3159_v38  ;;  %v739_v38 = vld [vmem:[#allocation6 + $0xe18] sm:$0xff] }
 0x13c   : > { %3190 = vmatpush3.bf16.msra.mxu1 %v3189_v37  ;;  %v738_v37 = vld [vmem:[#allocation6 + $0xe10] sm:$0xff]  ;;  %v779_v31 = vld [vmem:[#allocation6 + $0xf58] sm:$0xff] }
 0x13d   : > { %3192 = vmatprep.subr.bf16.mxu1 %v3191_v42  ;;  %v756_v42 = vld [vmem:[#allocation6 + $0xea0] sm:$0xff] }
 0x13e   : > { %3162 = vmatpush3.bf16.msra.mxu0 %v3161_v48  ;;  %v280_v48 = vld [vmem:[%s3635_s18 + $0x1c0] sm:$0xff]  ;;  %v3215_v52 = vpack.c.bf16 %v757_v43, %v756_v42  ;;  %v3263_v43 = vpack.c.bf16 %v797_v35, %v796_v34 }
 0x13f   : > { %3164 = vmatprep.subr.bf16.mxu0 %v3163_v50  ;;  %v282_v50 = vld [vmem:[%s3635_s18 + $0x1d0] sm:$0xff] }
 0x140   : > { %3194 = vmatpush3.bf16.msra.mxu1 %v3193_v49  ;;  %v3213_v49 = vpack.c.bf16 %v739_v38, %v738_v37 }
 0x141   : > { %3196 = vmatprep.subr.bf16.mxu1 %v3195_v54  ;;  %v741_v54 = vld [vmem:[#allocation6 + $0xe28] sm:$0xff] }
 0x142   : > { %3166 = vmatpush3.bf16.msra.mxu0 %v3165_v60  ;;  %v790_v60 = vld [vmem:[#allocation6 + $0xfb0] sm:$0xff]  ;;  %v3217_v63 = vpack.c.bf16 %v741_v54, %v740_v53 }
 0x143   : > { %3168 = vmatprep.subr.bf16.mxu0 %v3167_v62  ;;  %v253_v62 = vld [vmem:[%s3635_s18 + $0xe8] sm:$0xff] }
 0x144   : > { %3198 = vmatpush3.bf16.msra.mxu1 %v3197_v61  ;;  %v791_v61 = vld [vmem:[#allocation6 + $0xfb8] sm:$0xff] }
 0x145   : > { %3200 = vmatprep.subr.bf16.mxu1 %v3199_v2  ;;  %v3219_v2 = vpack.c.bf16 %v759_v59, %v758_v58  ;;  %v3251_v6 = vpack.c.bf16 %v791_v61, %v790_v60  ;;  %v750_v58 = vld [vmem:[#allocation6 + $0xe70] sm:$0xff]  ;;  %v751_v59 = vld [vmem:[#allocation6 + $0xe78] sm:$0xff] }
 0x146   : > { %3170 = vmatpush3.bf16.msra.mxu0 %v3169_v8  ;;  %v760_v8 = vld [vmem:[#allocation6 + $0xec0] sm:$0xff] }
 0x147   : > { %3172 = vmatprep.subr.bf16.mxu0 %v3171_v10  ;;  %v792_v10 = vld [vmem:[#allocation6 + $0xfc0] sm:$0xff] }
 0x148   : > { %3202 = vmatpush3.bf16.msra.mxu1 %v3201_v9  ;;  %v761_v9 = vld [vmem:[#allocation6 + $0xec8] sm:$0xff]  ;;  %v3255_v18 = vpack.c.bf16 %v793_v11, %v792_v10  ;;  %v287_v10 = vld [vmem:[%s3635_s18 + $0x1f8] sm:$0xff] }
 0x149   : > { %3204 = vmatprep.subr.bf16.mxu1 %v3203_v14  ;;  %v3223_v14 = vpack.c.bf16 %v761_v9, %v760_v8  ;;  %v285_v8 = vld [vmem:[%s3635_s18 + $0x1e8] sm:$0xff] }
 0x14a   : > { %3174 = vmatpush3.bf16.msra.mxu0 %v3173_v20  ;;  %v762_v20 = vld [vmem:[#allocation6 + $0xed0] sm:$0xff] }
 0x14b   : > { %3208 = vmatprep.subr.bf16.mxu0 %v3207_v22  ;;  %v794_v22 = vld [vmem:[#allocation6 + $0xfd0] sm:$0xff] }
 0x14c   : > { %3206 = vmatpush3.bf16.msra.mxu1 %v3205_v21  ;;  %v763_v21 = vld [vmem:[#allocation6 + $0xed8] sm:$0xff]  ;;  %v3259_v30 = vpack.c.bf16 %v795_v23, %v794_v22 }
 0x14d   : > { %3240 = vmatprep.subr.bf16.mxu1 %v3239_v26  ;;  %1767 = vmatmul.mubr.f32.vlgmr.msra.gmra.mrb[24].mxu0 %v248_v25  ;;  %v3257_v25 = vpack.c.bf16 %v777_v19, %v776_v17  ;;  %v3227_v26 = vpack.c.bf16 %v763_v21, %v762_v20 }
 0x14e   : > { %3210 = vmatpush3.bf16.msra.mxu0 %v3209_v32  ;;  %1771 = vmatprep.mubr.f32.mxu0 %v281_v33  ;;  %v764_v32 = vld [vmem:[#allocation6 + $0xee0] sm:$0xff]  ;;  %v765_v33 = vld [vmem:[#allocation6 + $0xee8] sm:$0xff] }
 0x14f   : > { %1842 = vmatmul.mubr.f32.vlgmr.msra.gmra.mrb[24].mxu1 %v250_v29  ;;  %3212 = vmatprep.subr.bf16.mxu0 %v3211_v40  ;;  %v778_v29 = vld [vmem:[#allocation6 + $0xf50] sm:$0xff]  ;;  %v3231_v38 = vpack.c.bf16 %v765_v33, %v764_v32  ;;  %v749_v40 = vld [vmem:[#allocation6 + $0xe68] sm:$0xff] }
 0x150   : > { %3242 = vmatpush3.bf16.msra.mxu1 %v3241_v36  ;;  %1846 = vmatprep.mubr.f32.mxu1 %v283_v44  ;;  %v3229_v36 = vpack.c.bf16 %v747_v28, %v746_v27  ;;  %v3261_v37 = vpack.c.bf16 %v779_v31, %v778_v29  ;;  %v781_v44 = vld [vmem:[#allocation6 + $0xf68] sm:$0xff]  ;;  %v3233_v54 = vpack.c.bf16 %v749_v40, %v748_v39 }
 0x151   : > { %1772 = vmatmul.mubr.f32.gmra.mrb[26].mxu0 %v280_v48  ;;  %3244 = vmatprep.subr.bf16.mxu1 %v3243_v45  ;;  %v766_v45 = vld [vmem:[#allocation6 + $0xef0] sm:$0xff] }
 0x152   : > { %3214 = vmatpush3.bf16.msra.mxu0 %v3213_v49  ;;  %1916 = vmatprep.mubr.f32.mxu0 %v253_v62  ;;  %v3235_v57 = vpack.c.bf16 %v767_v46, %v766_v45  ;;  %v782_v62 = vld [vmem:[#allocation6 + $0xf70] sm:$0xff] }
 0x153   : > { %1847 = vmatmul.mubr.f32.gmra.mrb[26].mxu1 %v282_v50  ;;  %3216 = vmatprep.subr.bf16.mxu0 %v3215_v52  ;;  %v798_v50 = vld [vmem:[#allocation6 + $0xff0] sm:$0xff] }
 0x154   : > { %3246 = vmatpush3.bf16.msra.mxu1 %v3245_v51  ;;  %1991 = vmatprep.mubr.f32.mxu1 %v255_v0  ;;  %v799_v51 = vld [vmem:[#allocation6 + $0xff8] sm:$0xff] }
 0x155   : > { %3248 = vmatprep.subr.bf16.mxu1 %v3247_v56  ;;  %v3265_v56 = vpack.c.bf16 %v781_v44, %v780_v41  ;;  %v3267_v61 = vpack.c.bf16 %v799_v51, %v798_v50 }
 0x156   : > { %3218 = vmatpush3.bf16.msra.mxu0 %v3217_v63  ;;  %v783_v63 = vld [vmem:[#allocation6 + $0xf78] sm:$0xff] }
 0x157   : > { %3220 = vmatprep.subr.bf16.mxu0 %v3219_v2  ;;  %v3269_v2 = vpack.c.bf16 %v783_v63, %v782_v62 }
 0x158   : > { %3250 = vmatpush3.bf16.msra.mxu1 %v3249_v1  ;;  %v3237_v1 = vpack.c.bf16 %v751_v59, %v750_v58 }
 0x159   : > { %3252 = vmatprep.subr.bf16.mxu1 %v3251_v6 }
 0x15a   : > { %3222 = vmatpush3.bf16.msra.mxu0 %v3221_v12 }
 0x15b   : > { %3224 = vmatprep.subr.bf16.mxu0 %v3223_v14  ;;  %v284_v14 = vld [vmem:[%s3635_s18 + $0x1e0] sm:$0xff] }
 0x15c   : > { %3254 = vmatpush3.bf16.msra.mxu1 %v3253_v13 }
 0x15d   : > { %3256 = vmatprep.subr.bf16.mxu1 %v3255_v18 }
 0x15e   : > { %3226 = vmatpush3.bf16.msra.mxu0 %v3225_v24 }
 0x15f   : > { %3228 = vmatprep.subr.bf16.mxu0 %v3227_v26 }
 0x160   : > { %3258 = vmatpush3.bf16.msra.mxu1 %v3257_v25  ;;  %v2183_v42 = vpop.f32.mrb[0].mxu0 }
 0x161   : > { %3260 = vmatprep.subr.bf16.mxu1 %v3259_v30  ;;  %v2184_v48 = vpop.f32.mrb[1].mxu0 }
 0x162   : > { %v2221_v49 = vpop.f32.mrb[0].mxu1  ;;  %v2185_v52 = vadd.f32 %v2184_v48, %v2183_v42  ;;  %3230 = vmatpush3.bf16.msra.mxu0 %v3229_v36 }
 0x163   : > { %v2222_v53 = vpop.f32.mrb[1].mxu1  ;;  %3232 = vmatprep.subr.bf16.mxu0 %v3231_v38 }
 0x164   : > { %v2223_v55 = vadd.f32 %v2222_v53, %v2221_v49  ;;  %3262 = vmatpush3.bf16.msra.mxu1 %v3261_v37  ;;  %v869_v60 = vadd.f32 %v2185_v52, %v801_v47  ;;  %v2186_v3 = vpop.f32.mrb[2].mxu0 }
 0x165   : > { %3264 = vmatprep.subr.bf16.mxu1 %v3263_v43  ;;  %v2187_v4 = vpop.f32.mrb[3].mxu0 }
 0x166   : > { %v944_v0 = vadd.f32 %v2223_v55, %v869_v60  ;;  %3234 = vmatpush3.bf16.msra.mxu0 %v3233_v54  ;;  %v2188_v6 = vadd.f32 %v2187_v4, %v2186_v3  ;;  %v2224_v9 = vpop.f32.mrb[2].mxu1 }
 0x167   : > { %3236 = vmatprep.subr.bf16.mxu0 %v3235_v57  ;;  %v2225_v12 = vpop.f32.mrb[3].mxu1 }
 0x168   : > { %3266 = vmatpush3.bf16.msra.mxu1 %v3265_v56  ;;  %v874_v11 = vadd.f32 %v2188_v6, %v801_v47  ;;  %v2226_v13 = vadd.f32 %v2225_v12, %v2224_v9 }
 0x169   : > { %3268 = vmatprep.subr.bf16.mxu1 %v3267_v61 }
 0x16a   : > { %3238 = vmatpush3.bf16.msra.mxu0 %v3237_v1  ;;  %v949_v16 = vadd.f32 %v2226_v13, %v874_v11 }
 0x16c   : > { %3270 = vmatpush3.bf16.msra.mxu1 %v3269_v2 }
 0x16d   : > { %1917 = vmatmul.mubr.f32.vlgmr.msra.gmra.mrb[28].mxu0 %v252_v5 }
 0x16e   : > { %1921 = vmatprep.mubr.f32.mxu0 %v285_v8 }
 0x16f   : > { %1992 = vmatmul.mubr.f32.vlgmr.msra.gmra.mrb[28].mxu1 %v254_v7 }
 0x170   : > { %1996 = vmatprep.mubr.f32.mxu1 %v287_v10 }
 0x171   : > { %1922 = vmatmul.mubr.f32.gmra.mrb[30].mxu0 %v284_v14 }
 0x173   : > { %1997 = vmatmul.mubr.f32.gmra.mrb[30].mxu1 %v286_v15 }
 0x180   : > { %v2259_v17 = vpop.f32.mrb[4].mxu0 }
 0x181   : > { %v2260_v18 = vpop.f32.mrb[5].mxu0 }
 0x182   : > { %v2297_v19 = vpop.f32.mrb[4].mxu1  ;;  %v2261_v20 = vadd.f32 %v2260_v18, %v2259_v17 }
 0x183   : > { %v2298_v21 = vpop.f32.mrb[5].mxu1 }
 0x184   : > { %v2299_v22 = vadd.f32 %v2298_v21, %v2297_v19  ;;  %v1019_v23 = vadd.f32 %v2261_v20, %v944_v0  ;;  %v2262_v24 = vpop.f32.mrb[6].mxu0 }
 0x185   : > { %v2263_v25 = vpop.f32.mrb[7].mxu0 }
 0x186   : > { %v2300_v26 = vpop.f32.mrb[6].mxu1  ;;  %v1094_v27 = vadd.f32 %v2299_v22, %v1019_v23  ;;  %v2264_v28 = vadd.f32 %v2263_v25, %v2262_v24 }
 0x187   : > { %v2301_v29 = vpop.f32.mrb[7].mxu1 }
 0x188   : > { %v2302_v30 = vadd.f32 %v2301_v29, %v2300_v26  ;;  %v1024_v31 = vadd.f32 %v2264_v28, %v949_v16 }
 0x18a   : > { %v1099_v32 = vadd.f32 %v2302_v30, %v1024_v31 }
 0x1a0   : > { %v2335_v33 = vpop.f32.mrb[8].mxu0 }
 0x1a1   : > { %v2336_v34 = vpop.f32.mrb[9].mxu0 }
 0x1a2   : > { %v2373_v35 = vpop.f32.mrb[8].mxu1  ;;  %v2337_v36 = vadd.f32 %v2336_v34, %v2335_v33 }
 0x1a3   : > { %v2374_v37 = vpop.f32.mrb[9].mxu1 }
 0x1a4   : > { %v2375_v38 = vadd.f32 %v2374_v37, %v2373_v35  ;;  %v1169_v39 = vadd.f32 %v2337_v36, %v1094_v27  ;;  %v2338_v40 = vpop.f32.mrb[10].mxu0 }
 0x1a5   : > { %v2339_v41 = vpop.f32.mrb[11].mxu0 }
 0x1a6   : > { %v2376_v42 = vpop.f32.mrb[10].mxu1  ;;  %v1244_v43 = vadd.f32 %v2375_v38, %v1169_v39  ;;  %v2340_v44 = vadd.f32 %v2339_v41, %v2338_v40 }
 0x1a7   : > { %v2377_v45 = vpop.f32.mrb[11].mxu1 }
 0x1a8   : > { %v2378_v46 = vadd.f32 %v2377_v45, %v2376_v42  ;;  %v1174_v47 = vadd.f32 %v2340_v44, %v1099_v32 }
 0x1aa   : > { %v1249_v48 = vadd.f32 %v2378_v46, %v1174_v47 }
 0x1c0   : > { %v2411_v49 = vpop.f32.mrb[12].mxu0 }
 0x1c1   : > { %v2412_v50 = vpop.f32.mrb[13].mxu0 }
 0x1c2   : > { %v2449_v51 = vpop.f32.mrb[12].mxu1  ;;  %v2413_v52 = vadd.f32 %v2412_v50, %v2411_v49 }
 0x1c3   : > { %v2450_v53 = vpop.f32.mrb[13].mxu1 }
 0x1c4   : > { %v2451_v54 = vadd.f32 %v2450_v53, %v2449_v51  ;;  %v1319_v55 = vadd.f32 %v2413_v52, %v1244_v43  ;;  %v2414_v56 = vpop.f32.mrb[14].mxu0 }
 0x1c5   : > { %v2415_v57 = vpop.f32.mrb[15].mxu0 }
 0x1c6   : > { %v2452_v58 = vpop.f32.mrb[14].mxu1  ;;  %v1394_v59 = vadd.f32 %v2451_v54, %v1319_v55  ;;  %v2416_v60 = vadd.f32 %v2415_v57, %v2414_v56 }
 0x1c7   : > { %v2453_v61 = vpop.f32.mrb[15].mxu1 }
 0x1c8   : > { %v2454_v62 = vadd.f32 %v2453_v61, %v2452_v58  ;;  %v1324_v63 = vadd.f32 %v2416_v60, %v1249_v48 }
 0x1ca   : > { %v1399_v0 = vadd.f32 %v2454_v62, %v1324_v63 }
 0x1e0   : > { %v2487_v1 = vpop.f32.mrb[16].mxu0 }
 0x1e1   : > { %v2488_v2 = vpop.f32.mrb[17].mxu0 }
 0x1e2   : > { %v2525_v3 = vpop.f32.mrb[16].mxu1  ;;  %v2489_v4 = vadd.f32 %v2488_v2, %v2487_v1 }
 0x1e3   : > { %v2526_v5 = vpop.f32.mrb[17].mxu1 }
 0x1e4   : > { %v2527_v6 = vadd.f32 %v2526_v5, %v2525_v3  ;;  %v1469_v7 = vadd.f32 %v2489_v4, %v1394_v59  ;;  %v2490_v8 = vpop.f32.mrb[18].mxu0 }
 0x1e5   : > { %v2491_v9 = vpop.f32.mrb[19].mxu0 }
 0x1e6   : > { %v2528_v10 = vpop.f32.mrb[18].mxu1  ;;  %v1544_v11 = vadd.f32 %v2527_v6, %v1469_v7  ;;  %v2492_v12 = vadd.f32 %v2491_v9, %v2490_v8 }
 0x1e7   : > { %v2529_v13 = vpop.f32.mrb[19].mxu1 }
 0x1e8   : > { %v2530_v14 = vadd.f32 %v2529_v13, %v2528_v10  ;;  %v1474_v15 = vadd.f32 %v2492_v12, %v1399_v0 }
 0x1ea   : > { %v1549_v16 = vadd.f32 %v2530_v14, %v1474_v15 }
 0x200   : > { %v2563_v17 = vpop.f32.mrb[20].mxu0 }
 0x201   : > { %v2564_v18 = vpop.f32.mrb[21].mxu0 }
 0x202   : > { %v2601_v19 = vpop.f32.mrb[20].mxu1  ;;  %v2565_v20 = vadd.f32 %v2564_v18, %v2563_v17 }
 0x203   : > { %v2602_v21 = vpop.f32.mrb[21].mxu1 }
 0x204   : > { %v2603_v22 = vadd.f32 %v2602_v21, %v2601_v19  ;;  %v1619_v23 = vadd.f32 %v2565_v20, %v1544_v11  ;;  %v2566_v24 = vpop.f32.mrb[22].mxu0 }
 0x205   : > { %v2567_v25 = vpop.f32.mrb[23].mxu0 }
 0x206   : > { %v2604_v26 = vpop.f32.mrb[22].mxu1  ;;  %v1694_v27 = vadd.f32 %v2603_v22, %v1619_v23  ;;  %v2568_v28 = vadd.f32 %v2567_v25, %v2566_v24 }
 0x207   : > { %v2605_v29 = vpop.f32.mrb[23].mxu1 }
 0x208   : > { %v2606_v30 = vadd.f32 %v2605_v29, %v2604_v26  ;;  %v1624_v31 = vadd.f32 %v2568_v28, %v1549_v16 }
 0x20a   : > { %v1699_v32 = vadd.f32 %v2606_v30, %v1624_v31 }
 0x220   : > { %v2639_v33 = vpop.f32.mrb[24].mxu0 }
 0x221   : > { %v2640_v34 = vpop.f32.mrb[25].mxu0 }
 0x222   : > { %v2677_v35 = vpop.f32.mrb[24].mxu1  ;;  %v2641_v36 = vadd.f32 %v2640_v34, %v2639_v33 }
 0x223   : > { %v2678_v37 = vpop.f32.mrb[25].mxu1 }
 0x224   : > { %v2679_v38 = vadd.f32 %v2678_v37, %v2677_v35  ;;  %v1769_v39 = vadd.f32 %v2641_v36, %v1694_v27  ;;  %v2642_v40 = vpop.f32.mrb[26].mxu0 }
 0x225   : > { %v2643_v41 = vpop.f32.mrb[27].mxu0 }
 0x226   : > { %v2680_v42 = vpop.f32.mrb[26].mxu1  ;;  %v1844_v43 = vadd.f32 %v2679_v38, %v1769_v39  ;;  %v2644_v44 = vadd.f32 %v2643_v41, %v2642_v40 }
 0x227   : > { %v2681_v45 = vpop.f32.mrb[27].mxu1 }
 0x228   : > { %v2682_v46 = vadd.f32 %v2681_v45, %v2680_v42  ;;  %v1774_v47 = vadd.f32 %v2644_v44, %v1699_v32 }
 0x22a   : > { %v1849_v48 = vadd.f32 %v2682_v46, %v1774_v47 }
 0x240   : > { %v2715_v49 = vpop.f32.mrb[28].mxu0 }
 0x241   : > { %v2716_v50 = vpop.f32.mrb[29].mxu0 }
 0x242   : > { %v2753_v51 = vpop.f32.mrb[28].mxu1  ;;  %v2717_v52 = vadd.f32 %v2716_v50, %v2715_v49 }
 0x243   : > { %v2754_v53 = vpop.f32.mrb[29].mxu1 }
 0x244   : > { %v2755_v54 = vadd.f32 %v2754_v53, %v2753_v51  ;;  %v1919_v55 = vadd.f32 %v2717_v52, %v1844_v43  ;;  %v2718_v56 = vpop.f32.mrb[30].mxu0 }
 0x245   : > { %v2719_v57 = vpop.f32.mrb[31].mxu0 }
 0x246   : > { %v2756_v58 = vpop.f32.mrb[30].mxu1  ;;  %v1994_v59 = vadd.f32 %v2755_v54, %v1919_v55  ;;  %v2720_v60 = vadd.f32 %v2719_v57, %v2718_v56 }
 0x247   : > { %v2757_v61 = vpop.f32.mrb[31].mxu1 }
 0x248   : > { %v2758_v62 = vadd.f32 %v2757_v61, %v2756_v58  ;;  %v2136_v63 = vmul.f32 -1.442695, %v1994_v59  ;;  %v1924_v0 = vadd.f32 %v2720_v60, %v1849_v48 }
 0x24a   : > { %3327 = vpow2.f32 %v2136_v63  ;;  %v1999_v1 = vadd.f32 %v2758_v62, %v1924_v0 }
 0x24c   : > { %v2137_v2 = vmul.f32 -1.442695, %v1999_v1 }
 0x24e   : > { %3329 = vpow2.f32 %v2137_v2 }
 0x254   : > { %v3328_v3 = vpop.eup %3327 }
 0x255   : > { %v2008_v4 = vadd.f32 1.0, %v3328_v3 }
 0x257   : > { %3331 = vrcp.f32 %v2008_v4 }
 0x258   : > { %v3330_v5 = vpop.eup %3329 }
 0x259   : > { %v2009_v6 = vadd.f32 1.0, %v3330_v5 }
 0x25b   : > { %3333 = vrcp.f32 %v2009_v6 }
 0x260   : > { %2023 = sbr.rel (!%p3792_p8) target bundleno = 643 (0x283), region = 44 }
 0x261   : > { %v3332_v7 = vpop.eup %3331 }
 0x262   : > { %2014 = vst [vmem:[%s212_s6] sm:$0xff] %v3332_v7 }
 0x265   : > { %v3334_v8 = vpop.eup %3333 }
 0x266   : > { %2015 = vst [vmem:[%s212_s6 + $0x8] sm:$0xff] %v3334_v8 }
 0x267   : > { %s3801_s11 = smov (!%p2026_p9, %s2025_s11), 2 }
 0x268   : > { %s3717_s20 = sshll.u32 %s3801_s11, 7 }
 0x269   : > { %s2030_s21 = ssub.s32 256, %s3717_s20 }
 0x26a   : > { %2031 = vsyncadd %s2017_s7, %s2030_s21  ;;  %p2141_p10 = scmp.ne.s32.totalorder %s3717_s20, 0  ;;  %s2150_s28 = sshll.u32 %s3516_s2, 8 }
 0x26b   : > { %s3727_s5 = scalar_lea.hbm %s3777_s3, %s2150_s28  ;;  %s2036_s30 = sshll.u32 %s212_s6, 4  ;;  %s3729_s30 = int_to_ptr.vmem [resolvable:$true] %s2036_s30 }
 0x26c   : > { %s3391_s29 = scalar_lea.vmem %s3729_s30, %s3717_s20  ;;  %s3469_s23 = smov [#allocation8]  }
 0x26d   : > { %p3392_p1 = scmp.ne.s32.totalorder %s3729_s30, %s3391_s29  ;;  %s3395_s8 = sshll.u32 %s3469_s23, 4  ;;  %s3396_s8 = int_to_ptr.vmem [resolvable:$false] %s3395_s8 }
 0x26e   : > { %s3397_s2 = scalar_lea.vmem %s3396_s8, 512  ;;  %p3398_p4 = scmp.lt.s32.totalorder %s3729_s30, %s3396_s8 }
 0x26f   : > { %p3393_p0 = pnand %p3392_p1, %p2141_p10  ;;  %p3399_p6 = scmp.lt.s32.totalorder %s3397_s2, %s3391_s29 }
 0x271   : > { %p3394_p7 = pneg %p3393_p0  ;;  %p3400_p11 = por %p3399_p6, %p3398_p4 }
 0x273   : > { %p3401_p13 = pnand %p3400_p11, %p3394_p7 }
 0x275   : > { %3404 = shalt.err (!%p3401_p13)
}
 0x276   : > { %s3405_s12 = scalar_lea.hbm %s3727_s5, %s3717_s20  ;;  %s3409_s24 = scalar_lea.hbm %s3777_s3, 640 }
 0x277   : > { %p3406_p12 = scmp.ne.s32.totalorder %s3727_s5, %s3405_s12  ;;  %p3410_p3 = scmp.lt.u32.totalorder %s3727_s5, %s3777_s3 }
 0x278   : > { %p3411_p8 = scmp.lt.u32.totalorder %s3409_s24, %s3405_s12  ;;  %p3413_p1 = scmp.lt.u32.totalorder %s3405_s12, %s3727_s5 }
 0x279   : > { %p3407_p2 = pnand %p3406_p12, %p2141_p10 }
 0x27a   : > { %p3412_p9 = por %p3411_p8, %p3410_p3 }
 0x27b   : > { %p3408_p5 = pneg %p3407_p2 }
 0x27c   : > { %p3414_p0 = por %p3413_p1, %p3412_p9 }
 0x27e   : > { %p3415_p7 = pnand %p3414_p0, %p3408_p5 }
 0x280   : > { %3418 = shalt.err (!%p3415_p7)
}
 0x281   : > { %s3470_s10 = smov 128   ;;  %s3471_s11 = smov 8  }
 0x282   : > { %2042 = dma.vmem_to_hbm [thread:$0]  (%p2141_p10), %s3729_s30, %s3717_s20, %s3727_s5, %s2017_s7, %s3470_s10, %s3470_s10, %s3471_s11  }
 0x283 PF: > { %p3287_p4 = scmp.ge.s32.totalorder %s3461_s17, 2  ;;  %s2051_s21 = sand.u32 1, %s3449_s14  }
 0x284   : > { %p3793_p6 = scmp.ne.s32.totalorder %s3784_s26, 0  ;;  %s2052_s28 = scalar_lea.sflag [#allocation5], %s2051_s21 }
 0x286   : > { %p3282_p11 = pnand %p3287_p4, %p3793_p6 }
 0x288   : > { %3444 = dma.done.wait (!%p3282_p11), %s2052_s28, 256  }
 0x289   : > { %3446 = vsyncadd (!%p3282_p11), %s2052_s28, 4294967040  ;;  %p18_p13 = scmp.ge.s32.totalorder %s3520_s19, 5   ;;  %s3794_s14 = smov %s3453_s15 }
 0x28a   : > { %s3795_s15 = smov %s3457_s16  ;;  %s3796_s16 = smov %s3532_s22 }
 0x28b   : > { %s3797_s17 = smov %s3520_s19  ;;  %20 = sbr.rel (!%p18_p13) target bundleno = 8 (0x8), region = 81 }
 0x292   :  { %2057 = vsyncpa [#allocation4], 1 }
 0x293   :  { %2059 = vsyncpa [#allocation4 + $0x1], 1 }
 0x294   :  { %2060 = vsyncpa [#allocation7], 1 }
 0x295   :  { %2061 = vsyncpa [#allocation5], 1 }
 0x296   :  { %2063 = vsyncpa [#allocation5 + $0x1], 1 }

</bundles_post_ra>
